<compile_context>
chip_gen: v7x
topology: tpu7x:2x2x1
jax: 0.10.0
libtpu: 0.0.40
codegen_flags: <defaults>
</compile_context>

<pallas_src>
import math

import jax
import jax.numpy as jnp
from jax.experimental import pallas as pl
from jax.experimental.pallas import tpu as pltpu

FEAT_DIM = 512
OUT_PAD = 128          # lane-dense width for the final (512 -> 1) layer
LANE = 128
SUBLANE = 8


def _round_up(n, m):
    return ((n + m - 1) // m) * m


def _mlp_kernel(x_ref, w1_ref, b1_ref, w2_ref, b2_ref,
                w3_ref, b3_ref, w4_ref, b4_ref, o_ref):
    # All matmuls accumulate in f32 on the MXU; operands are cast to the
    # weight dtype (f32 or bf16) so bf16 weights hit the native bf16 MXU path.
    x = x_ref[...].astype(w1_ref.dtype)

    h = jnp.dot(x, w1_ref[...], preferred_element_type=jnp.float32)
    h = jnp.maximum(h + b1_ref[...], 0.0)

    h = jnp.dot(h.astype(w2_ref.dtype), w2_ref[...],
                preferred_element_type=jnp.float32)
    h = jnp.maximum(h + b2_ref[...], 0.0)

    h = jnp.dot(h.astype(w3_ref.dtype), w3_ref[...],
                preferred_element_type=jnp.float32)
    h = jnp.maximum(h + b3_ref[...], 0.0)

    # fc_final: padded to OUT_PAD output lanes (lane-dense store); col 0 real.
    o = jnp.dot(h.astype(w4_ref.dtype), w4_ref[...],
                preferred_element_type=jnp.float32)
    o_ref[...] = o + b4_ref[...]


def mlp512_forward(x, params, *, block_b=512):
    """x: [B, F, 8, 1]. params as produced by init_params. Returns [B, 1] f32."""
    B = x.shape[0]
    x_flat = x.reshape(B, -1).astype(jnp.float32)  # == torch.reshape(x, (B,-1))
    (w1, b1, w2, b2, w3, b3, w4p, b4p) = params

    # Zero-pad the flattened feature dim to match the lane-padded w1 rows
    # (extra columns multiply zero weight rows -> no effect on the result).
    in_pad = w1.shape[0]
    if x_flat.shape[1] != in_pad:
        x_flat = jnp.pad(x_flat, ((0, 0), (0, in_pad - x_flat.shape[1])))

    # Batch tile: multiple of 8 sublanes, capped at block_b; pad B so every
    # grid step processes a full (TB, in_pad) block.
    TB = min(block_b, _round_up(B, SUBLANE))
    B_pad = _round_up(B, TB)
    if B_pad != B:
        x_flat = jnp.pad(x_flat, ((0, B_pad - B), (0, 0)))
    grid = (B_pad // TB,)

    const = lambda i: (0, 0)  # weights/biases resident in VMEM (no re-DMA)
    in_specs = [
        pl.BlockSpec((TB, in_pad), lambda i: (i, 0)),     # x (double-buffered)
        pl.BlockSpec((in_pad, FEAT_DIM), const),          # w1 (row-padded)
        pl.BlockSpec((1, FEAT_DIM), const),               # b1
        pl.BlockSpec((FEAT_DIM, FEAT_DIM), const),        # w2
        pl.BlockSpec((1, FEAT_DIM), const),               # b2
        pl.BlockSpec((FEAT_DIM, FEAT_DIM), const),        # w3
        pl.BlockSpec((1, FEAT_DIM), const),               # b3
        pl.BlockSpec((FEAT_DIM, OUT_PAD), const),         # w4 (lane-padded)
        pl.BlockSpec((1, OUT_PAD), const),                # b4 (lane-padded)
    ]
    out_specs = pl.BlockSpec((TB, OUT_PAD), lambda i: (i, 0))

    flops = 2 * B_pad * (in_pad * FEAT_DIM
                         + 2 * FEAT_DIM * FEAT_DIM
                         + FEAT_DIM * OUT_PAD)
    bytes_accessed = (x_flat.size * x_flat.dtype.itemsize
                      + sum(int(p.size) * p.dtype.itemsize for p in params)
                      + B_pad * OUT_PAD * 4)

    out = pl.pallas_call(
        _mlp_kernel,
        out_shape=jax.ShapeDtypeStruct((B_pad, OUT_PAD), jnp.float32),
        grid=grid,
        in_specs=in_specs,
        out_specs=out_specs,
        compiler_params=pltpu.CompilerParams(
            dimension_semantics=("parallel",),
            vmem_limit_bytes=64 << 20),
        cost_estimate=pl.CostEstimate(
            flops=flops, transcendentals=0, bytes_accessed=bytes_accessed),
    )(x_flat, w1, b1, w2, b2, w3, b3, w4p, b4p)

    # torch.reshape(self.fc_final(x), (-1, 1)) -> take real column, drop padding.
    return out[:B, :1]


def init_params(key, in_channels, *, dtype=jnp.float32):
    """Deterministic synthetic parameters (PyTorch Linear-style init), stored
    as [in, out]; biases as [1, out]. First layer row-padded to a multiple of
    128 input lanes; final layer lane-padded to OUT_PAD output lanes."""
    ks = jax.random.split(key, 8)

    def linear(kw, kb, fan_in, fan_out):
        bound = 1.0 / math.sqrt(fan_in)
        w = jax.random.uniform(kw, (fan_in, fan_out), jnp.float32, -bound, bound)
        b = jax.random.uniform(kb, (1, fan_out), jnp.float32, -bound, bound)
        return w, b

    w1, b1 = linear(ks[0], ks[1], in_channels, FEAT_DIM)
    w2, b2 = linear(ks[2], ks[3], FEAT_DIM, FEAT_DIM)
    w3, b3 = linear(ks[4], ks[5], FEAT_DIM, FEAT_DIM)
    w4, b4 = linear(ks[6], ks[7], FEAT_DIM, 1)

    # Lane-pad w1 rows (zero rows: padded x columns contribute nothing).
    in_pad = _round_up(in_channels, LANE)
    w1p = jnp.zeros((in_pad, FEAT_DIM), jnp.float32).at[:in_channels, :].set(w1)

    # Lane-dense padding of fc_final: column 0 is the real output, rest zeros.
    w4p = jnp.zeros((FEAT_DIM, OUT_PAD), jnp.float32).at[:, :1].set(w4)
    b4p = jnp.zeros((1, OUT_PAD), jnp.float32).at[:, :1].set(b4)

    # Weights optionally in bf16 (MXU-native on v6e/v7x); biases stay f32.
    w1p, w2, w3, w4p = (w.astype(dtype) for w in (w1p, w2, w3, w4p))
    return (w1p, b1, w2, b2, w3, b3, w4p, b4p)


def _reference(x, params):
    (w1, b1, w2, b2, w3, b3, w4p, b4p) = params
    h = x.reshape(x.shape[0], -1).astype(jnp.float32)
    h = jnp.pad(h, ((0, 0), (0, w1.shape[0] - h.shape[1])))
    h = jnp.maximum(h @ w1.astype(jnp.float32) + b1, 0.0)
    h = jnp.maximum(h @ w2.astype(jnp.float32) + b2, 0.0)
    h = jnp.maximum(h @ w3.astype(jnp.float32) + b3, 0.0)
    return (h @ w4p.astype(jnp.float32) + b4p)[:, :1]


if __name__ == "__main__":
    key = jax.random.PRNGKey(0)
    k_x, k_p = jax.random.split(key)

    B, F = 2, 4                       # input [B, F, 8, 1]
    in_channels = F * 8 * 1           # flattened feature dim seen by fc
    x = jax.random.normal(k_x, (B, F, 8, 1), dtype=jnp.float32)

    # f32 weights: must match the pure-JAX reference tightly.
    params = init_params(k_p, in_channels, dtype=jnp.float32)
    out = jax.block_until_ready(mlp512_forward(x, params))
    ref = _reference(x, params)
    assert out.shape == (B, 1)
    assert jnp.allclose(out, ref, atol=1e-4, rtol=1e-4)

    # bf16 weights (v6e/v7x MXU-native path), f32 accumulation; loose tolerance.
    params_bf16 = init_params(k_p, in_channels, dtype=jnp.bfloat16)
    out_bf16 = jax.block_until_ready(mlp512_forward(x, params_bf16))
    assert out_bf16.shape == (B, 1)
    assert jnp.allclose(out_bf16, ref, atol=1e-1, rtol=1e-1)

    print("KERNEL_OK")
</pallas_src>

<mosaic_0001>
module attributes {stable_mosaic.version = 11 : i64} {
  func.func @_mlp_kernel(%arg0: i32, %arg1: memref<8x128xf32, #tpu.memory_space<vmem>>, %arg2: memref<128x512xf32, #tpu.memory_space<vmem>>, %arg3: memref<1x512xf32, #tpu.memory_space<vmem>>, %arg4: memref<512x512xf32, #tpu.memory_space<vmem>>, %arg5: memref<1x512xf32, #tpu.memory_space<vmem>>, %arg6: memref<512x512xf32, #tpu.memory_space<vmem>>, %arg7: memref<1x512xf32, #tpu.memory_space<vmem>>, %arg8: memref<512x128xf32, #tpu.memory_space<vmem>>, %arg9: memref<1x128xf32, #tpu.memory_space<vmem>>, %arg10: memref<8x128xf32, #tpu.memory_space<vmem>>) attributes {dimension_semantics = [#tpu.dimension_semantics<parallel>], iteration_bounds = array<i64: 1>, scalar_prefetch = 0 : i64, scratch_operands = 0 : i64, tpu.core_type = #tpu.core_type<tc>, window_params = [{transform_indices = @transform_0, window_bounds = array<i64: 8, 128>}, {pipeline_mode = #tpu.pipeline_mode<synchronous>, transform_indices = @transform_1, window_bounds = array<i64: 128, 512>}, {pipeline_mode = #tpu.pipeline_mode<synchronous>, transform_indices = @transform_2, window_bounds = array<i64: 1, 512>}, {pipeline_mode = #tpu.pipeline_mode<synchronous>, transform_indices = @transform_3, window_bounds = array<i64: 512, 512>}, {pipeline_mode = #tpu.pipeline_mode<synchronous>, transform_indices = @transform_4, window_bounds = array<i64: 1, 512>}, {pipeline_mode = #tpu.pipeline_mode<synchronous>, transform_indices = @transform_5, window_bounds = array<i64: 512, 512>}, {pipeline_mode = #tpu.pipeline_mode<synchronous>, transform_indices = @transform_6, window_bounds = array<i64: 1, 512>}, {pipeline_mode = #tpu.pipeline_mode<synchronous>, transform_indices = @transform_7, window_bounds = array<i64: 512, 128>}, {pipeline_mode = #tpu.pipeline_mode<synchronous>, transform_indices = @transform_8, window_bounds = array<i64: 1, 128>}, {transform_indices = @transform_9, window_bounds = array<i64: 8, 128>}]} {
    %c0 = arith.constant 0 : index
    %c0_0 = arith.constant 0 : index
    %0 = vector.load %arg1[%c0, %c0_0] : memref<8x128xf32, #tpu.memory_space<vmem>>, vector<8x128xf32>
    %c0_1 = arith.constant 0 : index
    %c0_2 = arith.constant 0 : index
    %1 = vector.load %arg2[%c0_1, %c0_2] : memref<128x512xf32, #tpu.memory_space<vmem>>, vector<128x512xf32>
    %cst = arith.constant dense<0.000000e+00> : vector<8x512xf32>
    %2 = tpu.matmul %0, %1, %cst {dimension_numbers = #tpu.dot_dimension_numbers<[1], [0], [0], [1], [0, 0, 1, 1], [], []>} : vector<8x128xf32>, vector<128x512xf32>, vector<8x512xf32> -> vector<8x512xf32>
    %c0_3 = arith.constant 0 : index
    %c0_4 = arith.constant 0 : index
    %3 = vector.load %arg3[%c0_3, %c0_4] : memref<1x512xf32, #tpu.memory_space<vmem>>, vector<1x512xf32>
    %4 = vector.broadcast %3 : vector<1x512xf32> to vector<8x512xf32>
    %5 = arith.addf %2, %4 : vector<8x512xf32>
    %cst_5 = arith.constant 0.000000e+00 : f32
    %6 = vector.broadcast %cst_5 : f32 to vector<8x512xf32>
    %7 = arith.maximumf %5, %6 : vector<8x512xf32>
    %c0_6 = arith.constant 0 : index
    %c0_7 = arith.constant 0 : index
    %8 = vector.load %arg4[%c0_6, %c0_7] : memref<512x512xf32, #tpu.memory_space<vmem>>, vector<512x512xf32>
    %cst_8 = arith.constant dense<0.000000e+00> : vector<8x512xf32>
    %9 = tpu.matmul %7, %8, %cst_8 {dimension_numbers = #tpu.dot_dimension_numbers<[1], [0], [0], [1], [0, 0, 1, 1], [], []>} : vector<8x512xf32>, vector<512x512xf32>, vector<8x512xf32> -> vector<8x512xf32>
    %c0_9 = arith.constant 0 : index
    %c0_10 = arith.constant 0 : index
    %10 = vector.load %arg5[%c0_9, %c0_10] : memref<1x512xf32, #tpu.memory_space<vmem>>, vector<1x512xf32>
    %11 = vector.broadcast %10 : vector<1x512xf32> to vector<8x512xf32>
    %12 = arith.addf %9, %11 : vector<8x512xf32>
    %cst_11 = arith.constant 0.000000e+00 : f32
    %13 = vector.broadcast %cst_11 : f32 to vector<8x512xf32>
    %14 = arith.maximumf %12, %13 : vector<8x512xf32>
    %c0_12 = arith.constant 0 : index
    %c0_13 = arith.constant 0 : index
    %15 = vector.load %arg6[%c0_12, %c0_13] : memref<512x512xf32, #tpu.memory_space<vmem>>, vector<512x512xf32>
    %cst_14 = arith.constant dense<0.000000e+00> : vector<8x512xf32>
    %16 = tpu.matmul %14, %15, %cst_14 {dimension_numbers = #tpu.dot_dimension_numbers<[1], [0], [0], [1], [0, 0, 1, 1], [], []>} : vector<8x512xf32>, vector<512x512xf32>, vector<8x512xf32> -> vector<8x512xf32>
    %c0_15 = arith.constant 0 : index
    %c0_16 = arith.constant 0 : index
    %17 = vector.load %arg7[%c0_15, %c0_16] : memref<1x512xf32, #tpu.memory_space<vmem>>, vector<1x512xf32>
    %18 = vector.broadcast %17 : vector<1x512xf32> to vector<8x512xf32>
    %19 = arith.addf %16, %18 : vector<8x512xf32>
    %cst_17 = arith.constant 0.000000e+00 : f32
    %20 = vector.broadcast %cst_17 : f32 to vector<8x512xf32>
    %21 = arith.maximumf %19, %20 : vector<8x512xf32>
    %c0_18 = arith.constant 0 : index
    %c0_19 = arith.constant 0 : index
    %22 = vector.load %arg8[%c0_18, %c0_19] : memref<512x128xf32, #tpu.memory_space<vmem>>, vector<512x128xf32>
    %cst_20 = arith.constant dense<0.000000e+00> : vector<8x128xf32>
    %23 = tpu.matmul %21, %22, %cst_20 {dimension_numbers = #tpu.dot_dimension_numbers<[1], [0], [0], [1], [0, 0, 1, 1], [], []>} : vector<8x512xf32>, vector<512x128xf32>, vector<8x128xf32> -> vector<8x128xf32>
    %c0_21 = arith.constant 0 : index
    %c0_22 = arith.constant 0 : index
    %24 = vector.load %arg9[%c0_21, %c0_22] : memref<1x128xf32, #tpu.memory_space<vmem>>, vector<1x128xf32>
    %25 = vector.broadcast %24 : vector<1x128xf32> to vector<8x128xf32>
    %26 = arith.addf %23, %25 : vector<8x128xf32>
    %c0_23 = arith.constant 0 : index
    %c0_24 = arith.constant 0 : index
    %27 = vector.load %arg10[%c0_23, %c0_24] : memref<8x128xf32, #tpu.memory_space<vmem>>, vector<8x128xf32>
    tpu.vector_store %arg10[%c0_23, %c0_24], %26 {strides = array<i32>} : memref<8x128xf32, #tpu.memory_space<vmem>>, vector<8x128xf32>,
    return
  }
  func.func @transform_0(%arg0: i32) -> (i32, i32) {
    %c0_i32 = arith.constant 0 : i32
    %c0_i32_0 = arith.constant 0 : i32
    return %arg0, %c0_i32 : i32, i32
  }
  func.func @transform_1(%arg0: i32) -> (i32, i32) {
    %c0_i32 = arith.constant 0 : i32
    %c0_i32_0 = arith.constant 0 : i32
    %c0_i32_1 = arith.constant 0 : i32
    return %c0_i32, %c0_i32_0 : i32, i32
  }
  func.func @transform_2(%arg0: i32) -> (i32, i32) {
    %c0_i32 = arith.constant 0 : i32
    %c0_i32_0 = arith.constant 0 : i32
    %c0_i32_1 = arith.constant 0 : i32
    return %c0_i32, %c0_i32_0 : i32, i32
  }
  func.func @transform_3(%arg0: i32) -> (i32, i32) {
    %c0_i32 = arith.constant 0 : i32
    %c0_i32_0 = arith.constant 0 : i32
    %c0_i32_1 = arith.constant 0 : i32
    return %c0_i32, %c0_i32_0 : i32, i32
  }
  func.func @transform_4(%arg0: i32) -> (i32, i32) {
    %c0_i32 = arith.constant 0 : i32
    %c0_i32_0 = arith.constant 0 : i32
    %c0_i32_1 = arith.constant 0 : i32
    return %c0_i32, %c0_i32_0 : i32, i32
  }
  func.func @transform_5(%arg0: i32) -> (i32, i32) {
    %c0_i32 = arith.constant 0 : i32
    %c0_i32_0 = arith.constant 0 : i32
    %c0_i32_1 = arith.constant 0 : i32
    return %c0_i32, %c0_i32_0 : i32, i32
  }
  func.func @transform_6(%arg0: i32) -> (i32, i32) {
    %c0_i32 = arith.constant 0 : i32
    %c0_i32_0 = arith.constant 0 : i32
    %c0_i32_1 = arith.constant 0 : i32
    return %c0_i32, %c0_i32_0 : i32, i32
  }
  func.func @transform_7(%arg0: i32) -> (i32, i32) {
    %c0_i32 = arith.constant 0 : i32
    %c0_i32_0 = arith.constant 0 : i32
    %c0_i32_1 = arith.constant 0 : i32
    return %c0_i32, %c0_i32_0 : i32, i32
  }
  func.func @transform_8(%arg0: i32) -> (i32, i32) {
    %c0_i32 = arith.constant 0 : i32
    %c0_i32_0 = arith.constant 0 : i32
    %c0_i32_1 = arith.constant 0 : i32
    return %c0_i32, %c0_i32_0 : i32, i32
  }
  func.func @transform_9(%arg0: i32) -> (i32, i32) {
    %c0_i32 = arith.constant 0 : i32
    %c0_i32_0 = arith.constant 0 : i32
    return %arg0, %c0_i32 : i32, i32
  }
}

</mosaic_0001>

<bundles_post_ra>
// kernel: tpu_custom_call.1
= control target key start
LH: loop header
LB: loop body
LE: loop exit
PB: predicated region body
PF: predicated region fallthrough
CT: control target
= control target key end

     0   :  { %14 = vsyncpa [#allocation3], 0  ;;  %s2957_s0 = inlined_call_operand.hbm [shape: f32[8,128], index: 0, kind: input, shape index: {}]   ;;  %s2958_s1 = inlined_call_operand.hbm [shape: f32[128,512], index: 1, kind: input, shape index: {}]   ;;  %s2959_s2 = inlined_call_operand.hbm [shape: f32[1,512], index: 2, kind: input, shape index: {}]   ;;  %s2960_s3 = inlined_call_operand.hbm [shape: f32[512,512], index: 3, kind: input, shape index: {}]   ;;  %s2961_s4 = inlined_call_operand.hbm [shape: f32[1,512], index: 4, kind: input, shape index: {}]   ;;  %s2962_s5 = inlined_call_operand.hbm [shape: f32[512,512], index: 5, kind: input, shape index: {}]   ;;  %s2963_s6 = inlined_call_operand.hbm [shape: f32[1,512], index: 6, kind: input, shape index: {}]   ;;  %s2964_s7 = inlined_call_operand.hbm [shape: f32[512,128], index: 7, kind: input, shape index: {}]   ;;  %s2965_s8 = inlined_call_operand.hbm [shape: f32[1,128], index: 8, kind: input, shape index: {}]   ;;  %s2966_s9 = inlined_call_operand.hbm [shape: f32[8,128], index: 9, kind: output, shape index: {}]  }
   0x1   :  { %15 = vsyncpa [#allocation6], 0 }
   0x2   :  { %16 = vsyncpa [#allocation9], 0 }
   0x3   :  { %17 = vsyncpa [#allocation12], 0 }
   0x4   :  { %18 = vsyncpa [#allocation15], 0 }
   0x5   :  { %19 = vsyncpa [#allocation4], 0  ;;  %s2715_s30 = smov [#allocation5]   ;;  %s2483_s13 = scalar_lea.hbm %s2958_s1, 8192 }
   0x6   :  { %s35_s10 = sshll.u32 %s2715_s30, 4  ;;  %p2484_p0 = scmp.ne.s32.totalorder %s2958_s1, %s2483_s13  ;;  %s36_s10 = int_to_ptr.vmem [resolvable:$true] %s35_s10 }
   0x7   :  { %p2487_p1 = scmp.lt.u32.totalorder %s2483_s13, %s2958_s1 }
   0x9   :  { %p2489_p2 = pnand %p2487_p1, %p2484_p0 }
   0xb   :  { %2492 = shalt.err (!%p2489_p2)
}
   0xc   :  { %s2493_s18 = scalar_lea.vmem %s36_s10, 8192  ;;  %p2498_p4 = scmp.lt.s32.totalorder %s36_s10, %s36_s10 }
   0xd   :  { %p2494_p3 = scmp.ne.s32.totalorder %s36_s10, %s2493_s18  ;;  %p2499_p5 = scmp.lt.s32.totalorder %s2493_s18, %s2493_s18 }
   0xf   :  { %p2500_p6 = por %p2499_p5, %p2498_p4 }
  0x11   :  { %p2501_p7 = pnand %p2500_p6, %p2494_p3 }
  0x13   :  { %2504 = shalt.err (!%p2501_p7)
}
  0x14   :  { %s2716_s19 = smov 512   ;;  %s2717_s20 = smov 32  }
  0x15   :  { %41 = dma.hbm_to_vmem [thread:$0]  %s2958_s1, 8192, %s36_s10, [#allocation6], %s2716_s19, %s2716_s19, %s2717_s20  }
  0x16   :  { %s2718_s23 = smov [#allocation8]   ;;  %s2719_s25 = smov [#allocation11]  }
  0x17   :  { %s57_s24 = sshll.u32 %s2718_s23, 4  ;;  %s79_s26 = sshll.u32 %s2719_s25, 4  ;;  %s58_s24 = int_to_ptr.vmem [resolvable:$true] %s57_s24  ;;  %s80_s26 = int_to_ptr.vmem [resolvable:$true] %s79_s26 }
  0x18   :  { %s2505_s29 = scalar_lea.hbm %s2960_s3, 32768 }
  0x19   :  { %p2506_p8 = scmp.ne.s32.totalorder %s2960_s3, %s2505_s29  ;;  %p2509_p9 = scmp.lt.u32.totalorder %s2505_s29, %s2960_s3 }
  0x1b   :  { %p2511_p10 = pnand %p2509_p9, %p2506_p8 }
  0x1d   :  { %2514 = shalt.err (!%p2511_p10)
}
  0x1e   :  { %s2515_s1 = scalar_lea.vmem %s58_s24, 32768  ;;  %p2520_p12 = scmp.lt.s32.totalorder %s58_s24, %s58_s24 }
  0x1f   :  { %p2516_p11 = scmp.ne.s32.totalorder %s58_s24, %s2515_s1  ;;  %p2521_p13 = scmp.lt.s32.totalorder %s2515_s1, %s2515_s1 }
  0x21   :  { %p2522_p0 = por %p2521_p13, %p2520_p12 }
  0x23   :  { %p2523_p1 = pnand %p2522_p0, %p2516_p11 }
  0x25   :  { %2526 = shalt.err (!%p2523_p1)
}
  0x26   :  { %63 = dma.hbm_to_vmem [thread:$0]  %s2960_s3, 32768, %s58_s24, [#allocation9], %s2716_s19, %s2716_s19, %s2717_s20  }
  0x27   :  { %s2527_s17 = scalar_lea.hbm %s2962_s5, 32768 }
  0x28   :  { %p2528_p2 = scmp.ne.s32.totalorder %s2962_s5, %s2527_s17  ;;  %p2531_p3 = scmp.lt.u32.totalorder %s2527_s17, %s2962_s5 }
  0x2a   :  { %p2533_p4 = pnand %p2531_p3, %p2528_p2 }
  0x2c   :  { %2536 = shalt.err (!%p2533_p4)
}
  0x2d   :  { %s2537_s25 = scalar_lea.vmem %s80_s26, 32768  ;;  %p2542_p6 = scmp.lt.s32.totalorder %s80_s26, %s80_s26 }
  0x2e   :  { %p2538_p5 = scmp.ne.s32.totalorder %s80_s26, %s2537_s25  ;;  %p2543_p7 = scmp.lt.s32.totalorder %s2537_s25, %s2537_s25 }
  0x30   :  { %p2544_p8 = por %p2543_p7, %p2542_p6 }
  0x32   :  { %p2545_p9 = pnand %p2544_p8, %p2538_p5 }
  0x34   :  { %2548 = shalt.err (!%p2545_p9)
}
  0x35   :  { %85 = dma.hbm_to_vmem [thread:$0]  %s2962_s5, 32768, %s80_s26, [#allocation12], %s2716_s19, %s2716_s19, %s2717_s20  }
  0x36   :  { %s2720_s27 = smov [#allocation14]   ;;  %s2549_s11 = scalar_lea.hbm %s2964_s7, 8192 }
  0x37   :  { %s101_s28 = sshll.u32 %s2720_s27, 4  ;;  %p2550_p10 = scmp.ne.s32.totalorder %s2964_s7, %s2549_s11  ;;  %s102_s28 = int_to_ptr.vmem [resolvable:$true] %s101_s28 }
  0x38   :  { %p2553_p11 = scmp.lt.u32.totalorder %s2549_s11, %s2964_s7 }
  0x3a   :  { %p2555_p12 = pnand %p2553_p11, %p2550_p10 }
  0x3c   :  { %2558 = shalt.err (!%p2555_p12)
}
  0x3d   :  { %s2559_s14 = scalar_lea.vmem %s102_s28, 8192  ;;  %p2564_p0 = scmp.lt.s32.totalorder %s102_s28, %s102_s28 }
  0x3e   :  { %p2560_p13 = scmp.ne.s32.totalorder %s102_s28, %s2559_s14  ;;  %p2565_p1 = scmp.lt.s32.totalorder %s2559_s14, %s2559_s14 }
  0x40   :  { %p2566_p2 = por %p2565_p1, %p2564_p0 }
  0x42   :  { %p2567_p3 = pnand %p2566_p2, %p2560_p13 }
  0x44   :  { %2570 = shalt.err (!%p2567_p3)
}
  0x45   :  { %s2721_s5 = smov 128   ;;  %s2722_s19 = smov 8  }
  0x46   :  { %107 = dma.hbm_to_vmem [thread:$0]  %s2964_s7, 8192, %s102_s28, [#allocation15], %s2721_s5, %s2721_s5, %s2722_s19  }
  0x47   :  { %s2723_s15 = smov [#allocation2]   ;;  %s2724_s17 = smov [#allocation7]  }
  0x48   :  { %s26_s16 = sshll.u32 %s2723_s15, 4  ;;  %s48_s18 = sshll.u32 %s2724_s17, 4  ;;  %s27_s16 = int_to_ptr.vmem [resolvable:$true] %s26_s16  ;;  %s49_s18 = int_to_ptr.vmem [resolvable:$true] %s48_s18 }
  0x49   :  { %s2571_s23 = scalar_lea.hbm %s2957_s0, 128 }
  0x4a   :  { %p2572_p4 = scmp.ne.s32.totalorder %s2957_s0, %s2571_s23  ;;  %p2575_p5 = scmp.lt.u32.totalorder %s2571_s23, %s2957_s0 }
  0x4c   :  { %p2577_p6 = pnand %p2575_p5, %p2572_p4 }
  0x4e   :  { %2580 = shalt.err (!%p2577_p6)
}
  0x4f   :  { %s2581_s7 = scalar_lea.vmem %s27_s16, 128  ;;  %p2586_p8 = scmp.lt.s32.totalorder %s27_s16, %s27_s16 }
  0x50   :  { %p2582_p7 = scmp.ne.s32.totalorder %s27_s16, %s2581_s7  ;;  %p2587_p9 = scmp.lt.s32.totalorder %s2581_s7, %s2581_s7 }
  0x52   :  { %p2588_p10 = por %p2587_p9, %p2586_p8 }
  0x54   :  { %p2589_p11 = pnand %p2588_p10, %p2582_p7 }
  0x56   :  { %2592 = shalt.err (!%p2589_p11)
}
  0x57   :  { %29 = dma.hbm_to_vmem [thread:$0]  %s2957_s0, 128, %s27_s16, [#allocation3]  }
  0x58   :  { %s2593_s12 = scalar_lea.hbm %s2959_s2, 64 }
  0x59   :  { %p2594_p12 = scmp.ne.s32.totalorder %s2959_s2, %s2593_s12  ;;  %p2597_p13 = scmp.lt.u32.totalorder %s2593_s12, %s2959_s2 }
  0x5b   :  { %p2599_p0 = pnand %p2597_p13, %p2594_p12 }
  0x5d   :  { %2602 = shalt.err (!%p2599_p0)
}
  0x5e   :  { %s2603_s5 = scalar_lea.vmem %s49_s18, 64  ;;  %p2608_p2 = scmp.lt.s32.totalorder %s49_s18, %s49_s18 }
  0x5f   :  { %p2604_p1 = scmp.ne.s32.totalorder %s49_s18, %s2603_s5  ;;  %p2609_p3 = scmp.lt.s32.totalorder %s2603_s5, %s2603_s5 }
  0x61   :  { %p2610_p4 = por %p2609_p3, %p2608_p2 }
  0x63   :  { %p2611_p5 = pnand %p2610_p4, %p2604_p1 }
  0x65   :  { %2614 = shalt.err (!%p2611_p5)
}
  0x66   :  { %51 = dma.hbm_to_vmem [thread:$0]  %s2959_s2, 64, %s49_s18, [#allocation6]  }
  0x67   :  { %s2725_s20 = smov [#allocation10]   ;;  %s2726_s15 = smov [#allocation13]  }
  0x68   :  { %s70_s26 = sshll.u32 %s2725_s20, 4  ;;  %s92_s16 = sshll.u32 %s2726_s15, 4  ;;  %s71_s26 = int_to_ptr.vmem [resolvable:$true] %s70_s26  ;;  %s93_s16 = int_to_ptr.vmem [resolvable:$true] %s92_s16 }
  0x69   :  { %s2615_s22 = scalar_lea.hbm %s2961_s4, 64 }
  0x6a   :  { %p2616_p6 = scmp.ne.s32.totalorder %s2961_s4, %s2615_s22  ;;  %p2619_p7 = scmp.lt.u32.totalorder %s2615_s22, %s2961_s4 }
  0x6c   :  { %p2621_p8 = pnand %p2619_p7, %p2616_p6 }
  0x6e   :  { %2624 = shalt.err (!%p2621_p8)
}
  0x6f   :  { %s2625_s2 = scalar_lea.vmem %s71_s26, 64  ;;  %p2630_p10 = scmp.lt.s32.totalorder %s71_s26, %s71_s26 }
  0x70   :  { %p2626_p9 = scmp.ne.s32.totalorder %s71_s26, %s2625_s2  ;;  %p2631_p11 = scmp.lt.s32.totalorder %s2625_s2, %s2625_s2 }
  0x72   :  { %p2632_p12 = por %p2631_p11, %p2630_p10 }
  0x74   :  { %p2633_p13 = pnand %p2632_p12, %p2626_p9 }
  0x76   :  { %2636 = shalt.err (!%p2633_p13)
}
  0x77   :  { %73 = dma.hbm_to_vmem [thread:$0]  %s2961_s4, 64, %s71_s26, [#allocation9]  }
  0x78   :  { %s2637_s29 = scalar_lea.hbm %s2963_s6, 64 }
  0x79   :  { %p2638_p0 = scmp.ne.s32.totalorder %s2963_s6, %s2637_s29  ;;  %p2641_p1 = scmp.lt.u32.totalorder %s2637_s29, %s2963_s6 }
  0x7b   :  { %p2643_p2 = pnand %p2641_p1, %p2638_p0 }
  0x7d   :  { %2646 = shalt.err (!%p2643_p2)
}
  0x7e   :  { %s2647_s1 = scalar_lea.vmem %s93_s16, 64  ;;  %p2652_p4 = scmp.lt.s32.totalorder %s93_s16, %s93_s16 }
  0x7f   :  { %p2648_p3 = scmp.ne.s32.totalorder %s93_s16, %s2647_s1  ;;  %p2653_p5 = scmp.lt.s32.totalorder %s2647_s1, %s2647_s1 }
  0x81   :  { %p2654_p6 = por %p2653_p5, %p2652_p4 }
  0x83   :  { %p2655_p7 = pnand %p2654_p6, %p2648_p3 }
  0x85   :  { %2658 = shalt.err (!%p2655_p7)
}
  0x86   :  { %95 = dma.hbm_to_vmem [thread:$0]  %s2963_s6, 64, %s93_s16, [#allocation12]  }
  0x87   :  { %s2727_s14 = smov [#allocation16]   ;;  %s2659_s20 = scalar_lea.hbm %s2965_s8, 16 }
  0x88   :  { %s114_s5 = sshll.u32 %s2727_s14, 4  ;;  %p2660_p8 = scmp.ne.s32.totalorder %s2965_s8, %s2659_s20  ;;  %s115_s5 = int_to_ptr.vmem [resolvable:$true] %s114_s5 }
  0x89   :  { %p2663_p9 = scmp.lt.u32.totalorder %s2659_s20, %s2965_s8 }
  0x8b   :  { %p2665_p10 = pnand %p2663_p9, %p2660_p8 }
  0x8d   :  { %2668 = shalt.err (!%p2665_p10)
}
  0x8e   :  { %s2669_s22 = scalar_lea.vmem %s115_s5, 16  ;;  %s2673_s6 = scalar_lea.vmem %s115_s5, 32 }
  0x8f   :  { %p2670_p11 = scmp.ne.s32.totalorder %s115_s5, %s2669_s22  ;;  %p2674_p12 = scmp.lt.s32.totalorder %s115_s5, %s115_s5 }
  0x90   :  { %p2675_p13 = scmp.lt.s32.totalorder %s2673_s6, %s2669_s22 }
  0x92   :  { %p2676_p0 = por %p2675_p13, %p2674_p12 }
  0x94   :  { %p2677_p1 = pnand %p2676_p0, %p2670_p11 }
  0x96   :  { %2680 = shalt.err (!%p2677_p1)
}
  0x97   :  { %117 = dma.hbm_to_vmem [thread:$0]  %s2965_s8, 16, %s115_s5, [#allocation15]  }
  0x98   :  { %2703 = dma.done.wait [#allocation3], 128  }
  0x99   :  { %2704 = vsyncadd [#allocation3], 4294967168 }
  0x9a   :  { %2705 = dma.done.wait [#allocation6], 8256  }
  0x9b   :  { %2706 = vsyncadd [#allocation6], 4294959040 }
  0x9c   :  { %2707 = dma.done.wait [#allocation9], 32832  }
  0x9d   :  { %2708 = vsyncadd [#allocation9], 4294934464 }
  0x9e   :  { %2709 = dma.done.wait [#allocation12], 32832  }
  0x9f   :  { %2710 = vsyncadd [#allocation12], 4294934464 }
  0xa0   :  { %2711 = dma.done.wait [#allocation15], 8208  }
  0xa1   :  { %2712 = vsyncadd [#allocation15], 4294959088  ;;  %v2728_v0 = vmov 0.0   ;;  %v147_v1 = vld [vmem:[#allocation5 + $0x8] sm:$0xff]  ;;  %v146_v3 = vld [vmem:[#allocation5] sm:$0xff]  ;;  %s2729_s8 = smov [#allocation17]  }
  0xa2   :  { %296 = vmatprep.mubr.f32.mxu0 %v2728_v0  ;;  %367 = vmatprep.mubr.f32.mxu1 %v2728_v0  ;;  %v151_v2 = vld [vmem:[#allocation5 + $0x28] sm:$0xff]  ;;  %v150_v5 = vld [vmem:[#allocation5 + $0x20] sm:$0xff]  ;;  %v149_v28 = vld [vmem:[#allocation5 + $0x18] sm:$0xff]  ;;  %s1728_s25 = sshll.u32 %s2729_s8, 4  ;;  %s1729_s25 = int_to_ptr.vmem [resolvable:$true] %s1728_s25 }
  0xa3   :  { %v1812_v4 = vpack.c.bf16 %v151_v2, %v147_v1  ;;  %v155_v6 = vld [vmem:[#allocation5 + $0x48] sm:$0xff]  ;;  %v1814_v8 = vpack.c.bf16 %v150_v5, %v146_v3  ;;  %v154_v10 = vld [vmem:[#allocation5 + $0x40] sm:$0xff]  ;;  %v153_v29 = vld [vmem:[#allocation5 + $0x38] sm:$0xff]  ;;  %s2681_s3 = scalar_lea.vmem %s1729_s25, 128  ;;  %p2686_p3 = scmp.lt.s32.totalorder %s1729_s25, %s1729_s25 }
  0xa4   :  { %v159_v7 = vld [vmem:[#allocation5 + $0x68] sm:$0xff]  ;;  %v158_v11 = vld [vmem:[#allocation5 + $0x60] sm:$0xff]  ;;  %v148_v30 = vld [vmem:[#allocation5 + $0x10] sm:$0xff]  ;;  %v1844_v32 = vpack.c.bf16 %v153_v29, %v149_v28  ;;  %p2682_p2 = scmp.ne.s32.totalorder %s1729_s25, %s2681_s3  ;;  %p2687_p4 = scmp.lt.s32.totalorder %s2681_s3, %s2681_s3 }
  0xa5   :  { %v1816_v9 = vpack.c.bf16 %v159_v7, %v155_v6  ;;  %v163_v12 = vld [vmem:[#allocation5 + $0x88] sm:$0xff]  ;;  %1813 = vmatprep.subr.bf16.mxu0 %v1812_v4  ;;  %v1818_v14 = vpack.c.bf16 %v158_v11, %v154_v10  ;;  %v162_v16 = vld [vmem:[#allocation5 + $0x80] sm:$0xff]  ;;  %v152_v33 = vld [vmem:[#allocation5 + $0x30] sm:$0xff] }
  0xa6   :  { %v167_v13 = vld [vmem:[#allocation5 + $0xa8] sm:$0xff]  ;;  %1815 = vmatpush1.bf16.msra.mxu0 %v1814_v8  ;;  %v166_v17 = vld [vmem:[#allocation5 + $0xa0] sm:$0xff]  ;;  %v157_v34 = vld [vmem:[#allocation5 + $0x58] sm:$0xff]  ;;  %v1846_v37 = vpack.c.bf16 %v152_v33, %v148_v30  ;;  %1845 = vmatprep.subr.bf16.mxu1 %v1844_v32  ;;  %p2688_p5 = por %p2687_p4, %p2686_p3 }
  0xa7   :  { %1817 = vmatprep.subr.bf16.mxu0 %v1816_v9  ;;  %v1820_v15 = vpack.c.bf16 %v167_v13, %v163_v12  ;;  %v171_v18 = vld [vmem:[#allocation5 + $0xc8] sm:$0xff]  ;;  %v1822_v20 = vpack.c.bf16 %v166_v17, %v162_v16  ;;  %v170_v22 = vld [vmem:[#allocation5 + $0xc0] sm:$0xff]  ;;  %v161_v35 = vld [vmem:[#allocation5 + $0x78] sm:$0xff] }
  0xa8   :  { %v175_v19 = vld [vmem:[#allocation5 + $0xe8] sm:$0xff]  ;;  %v174_v23 = vld [vmem:[#allocation5 + $0xe0] sm:$0xff]  ;;  %v1848_v38 = vpack.c.bf16 %v161_v35, %v157_v34  ;;  %v156_v39 = vld [vmem:[#allocation5 + $0x50] sm:$0xff]  ;;  %1847 = vmatpush1.bf16.msra.mxu1 %v1846_v37  ;;  %p2689_p6 = pnand %p2688_p5, %p2682_p2 }
  0xa9   :  { %v1824_v21 = vpack.c.bf16 %v175_v19, %v171_v18  ;;  %v179_v24 = vld [vmem:[#allocation5 + $0x108] sm:$0xff]  ;;  %v178_v26 = vld [vmem:[#allocation5 + $0x100] sm:$0xff]  ;;  %v1826_v31 = vpack.c.bf16 %v174_v23, %v170_v22  ;;  %v160_v40 = vld [vmem:[#allocation5 + $0x70] sm:$0xff] }
  0xaa   :  { %1819 = vmatpush1.bf16.msra.mxu0 %v1818_v14  ;;  %v183_v25 = vld [vmem:[#allocation5 + $0x128] sm:$0xff]  ;;  %v182_v27 = vld [vmem:[#allocation5 + $0x120] sm:$0xff]  ;;  %v165_v41 = vld [vmem:[#allocation5 + $0x98] sm:$0xff]  ;;  %v1850_v45 = vpack.c.bf16 %v160_v40, %v156_v39  ;;  %1849 = vmatprep.subr.bf16.mxu1 %v1848_v38 }
  0xab   :  { %1821 = vmatprep.subr.bf16.mxu0 %v1820_v15  ;;  %v1828_v36 = vpack.c.bf16 %v183_v25, %v179_v24  ;;  %v187_v42 = vld [vmem:[#allocation5 + $0x148] sm:$0xff]  ;;  %v169_v44 = vld [vmem:[#allocation5 + $0xb8] sm:$0xff]  ;;  %v1830_v46 = vpack.c.bf16 %v182_v27, %v178_v26  ;;  %v186_v47 = vld [vmem:[#allocation5 + $0x140] sm:$0xff] }
  0xac   :  { %v191_v43 = vld [vmem:[#allocation5 + $0x168] sm:$0xff]  ;;  %v1852_v48 = vpack.c.bf16 %v169_v44, %v165_v41  ;;  %v164_v49 = vld [vmem:[#allocation5 + $0x90] sm:$0xff]  ;;  %v190_v52 = vld [vmem:[#allocation5 + $0x160] sm:$0xff]  ;;  %1851 = vmatpush1.bf16.msra.mxu1 %v1850_v45 }
  0xad   :  { %v168_v50 = vld [vmem:[#allocation5 + $0xb0] sm:$0xff]  ;;  %v1832_v51 = vpack.c.bf16 %v191_v43, %v187_v42  ;;  %v173_v53 = vld [vmem:[#allocation5 + $0xd8] sm:$0xff]  ;;  %v195_v55 = vld [vmem:[#allocation5 + $0x188] sm:$0xff]  ;;  %v1834_v58 = vpack.c.bf16 %v190_v52, %v186_v47 }
  0xae   :  { %1823 = vmatpush1.bf16.msra.mxu0 %v1822_v20  ;;  %v177_v54 = vld [vmem:[#allocation5 + $0xf8] sm:$0xff]  ;;  %v199_v56 = vld [vmem:[#allocation5 + $0x1a8] sm:$0xff]  ;;  %v1854_v57 = vpack.c.bf16 %v168_v50, %v164_v49  ;;  %v194_v59 = vld [vmem:[#allocation5 + $0x180] sm:$0xff]  ;;  %1853 = vmatprep.subr.bf16.mxu1 %v1852_v48 }
  0xaf   :  { %1825 = vmatprep.subr.bf16.mxu0 %v1824_v21  ;;  %v1856_v60 = vpack.c.bf16 %v177_v54, %v173_v53  ;;  %v172_v61 = vld [vmem:[#allocation5 + $0xd0] sm:$0xff]  ;;  %v1836_v63 = vpack.c.bf16 %v199_v56, %v195_v55  ;;  %v198_v0 = vld [vmem:[#allocation5 + $0x1a0] sm:$0xff]  ;;  %v181_v1 = vld [vmem:[#allocation5 + $0x118] sm:$0xff] }
  0xb0   :  { %v176_v62 = vld [vmem:[#allocation5 + $0xf0] sm:$0xff]  ;;  %v185_v2 = vld [vmem:[#allocation5 + $0x138] sm:$0xff]  ;;  %v203_v3 = vld [vmem:[#allocation5 + $0x1c8] sm:$0xff]  ;;  %1855 = vmatpush1.bf16.msra.mxu1 %v1854_v57  ;;  %v1838_v6 = vpack.c.bf16 %v198_v0, %v194_v59 }
  0xb1   :  { %v207_v4 = vld [vmem:[#allocation5 + $0x1e8] sm:$0xff]  ;;  %v1858_v5 = vpack.c.bf16 %v176_v62, %v172_v61  ;;  %v202_v7 = vld [vmem:[#allocation5 + $0x1c0] sm:$0xff]  ;;  %1857 = vmatprep.subr.bf16.mxu1 %v1856_v60  ;;  %v1860_v8 = vpack.c.bf16 %v185_v2, %v181_v1  ;;  %v180_v9 = vld [vmem:[#allocation5 + $0x110] sm:$0xff] }
  0xb2   :  { %1827 = vmatpush1.bf16.msra.mxu0 %v1826_v31  ;;  %v184_v10 = vld [vmem:[#allocation5 + $0x130] sm:$0xff]  ;;  %v1840_v11 = vpack.c.bf16 %v207_v4, %v203_v3  ;;  %v206_v12 = vld [vmem:[#allocation5 + $0x1e0] sm:$0xff]  ;;  %v189_v13 = vld [vmem:[#allocation5 + $0x158] sm:$0xff] }
  0xb3   :  { %1829 = vmatprep.subr.bf16.mxu0 %v1828_v36  ;;  %v193_v14 = vld [vmem:[#allocation5 + $0x178] sm:$0xff]  ;;  %v379_v15 = vld [vmem:[#allocation8 + $0x8] sm:$0xff]  ;;  %v1862_v17 = vpack.c.bf16 %v184_v10, %v180_v9  ;;  %v1842_v18 = vpack.c.bf16 %v206_v12, %v202_v7  ;;  %v378_v25 = vld [vmem:[#allocation8] sm:$0xff] }
  0xb4   :  { %v383_v16 = vld [vmem:[#allocation8 + $0x28] sm:$0xff]  ;;  %1859 = vmatpush1.bf16.msra.mxu1 %v1858_v5  ;;  %v1864_v19 = vpack.c.bf16 %v193_v14, %v189_v13  ;;  %v197_v22 = vld [vmem:[#allocation5 + $0x198] sm:$0xff]  ;;  %v382_v26 = vld [vmem:[#allocation8 + $0x20] sm:$0xff] }
  0xb5   :  { %1861 = vmatprep.subr.bf16.mxu1 %v1860_v8  ;;  %v188_v20 = vld [vmem:[#allocation5 + $0x150] sm:$0xff]  ;;  %v201_v23 = vld [vmem:[#allocation5 + $0x1b8] sm:$0xff]  ;;  %v1876_v24 = vpack.c.bf16 %v383_v16, %v379_v15  ;;  %v1878_v35 = vpack.c.bf16 %v382_v26, %v378_v25  ;;  %v386_v38 = vld [vmem:[#allocation8 + $0x40] sm:$0xff] }
  0xb6   :  { %1831 = vmatpush1.bf16.msra.mxu0 %v1830_v46  ;;  %v192_v21 = vld [vmem:[#allocation5 + $0x170] sm:$0xff]  ;;  %v2897_v29 = vld [vmem:[#allocation2] sm:$0xff]  ;;  %v1868_v31 = vpack.c.bf16 %v201_v23, %v197_v22  ;;  %v390_v39 = vld [vmem:[#allocation8 + $0x60] sm:$0xff] }
  0xb7   :  { %1833 = vmatprep.subr.bf16.mxu0 %v1832_v51  ;;  %v387_v27 = vld [vmem:[#allocation8 + $0x48] sm:$0xff]  ;;  %v1866_v30 = vpack.c.bf16 %v192_v21, %v188_v20  ;;  %v205_v34 = vld [vmem:[#allocation5 + $0x1d8] sm:$0xff]  ;;  %v1882_v47 = vpack.c.bf16 %v390_v39, %v386_v38  ;;  %v394_v50 = vld [vmem:[#allocation8 + $0x80] sm:$0xff] }
  0xb8   :  { %v391_v28 = vld [vmem:[#allocation8 + $0x68] sm:$0xff]  ;;  %1863 = vmatpush1.bf16.msra.mxu1 %v1862_v17  ;;  %v209_v36 = vld [vmem:[#allocation5 + $0x1f8] sm:$0xff]  ;;  %v398_v51 = vld [vmem:[#allocation8 + $0xa0] sm:$0xff] }
  0xb9   :  { %1865 = vmatprep.subr.bf16.mxu1 %v1864_v19  ;;  %v196_v32 = vld [vmem:[#allocation5 + $0x190] sm:$0xff]  ;;  %v1880_v37 = vpack.c.bf16 %v391_v28, %v387_v27  ;;  %v1872_v43 = vpack.c.bf16 %v209_v36, %v205_v34  ;;  %v381_v46 = vld [vmem:[#allocation8 + $0x18] sm:$0xff]  ;;  %v1886_v59 = vpack.c.bf16 %v398_v51, %v394_v50  ;;  %v402_v62 = vld [vmem:[#allocation8 + $0xc0] sm:$0xff] }
  0xba   :  { %1835 = vmatpush1.bf16.msra.mxu0 %v1834_v58  ;;  %v200_v33 = vld [vmem:[#allocation5 + $0x1b0] sm:$0xff]  ;;  %v385_v48 = vld [vmem:[#allocation8 + $0x38] sm:$0xff]  ;;  %v410_v10 = vld [vmem:[#allocation8 + $0x100] sm:$0xff] }
  0xbb   :  { %1837 = vmatprep.subr.bf16.mxu0 %v1836_v63  ;;  %v395_v40 = vld [vmem:[#allocation8 + $0x88] sm:$0xff]  ;;  %v1870_v42 = vpack.c.bf16 %v200_v33, %v196_v32  ;;  %v2004_v55 = vpack.c.bf16 %v385_v48, %v381_v46  ;;  %v380_v56 = vld [vmem:[#allocation8 + $0x10] sm:$0xff]  ;;  %v389_v58 = vld [vmem:[#allocation8 + $0x58] sm:$0xff] }
  0xbc   :  { %v399_v41 = vld [vmem:[#allocation8 + $0xa8] sm:$0xff]  ;;  %1867 = vmatpush1.bf16.msra.mxu1 %v1866_v30  ;;  %v384_v57 = vld [vmem:[#allocation8 + $0x30] sm:$0xff]  ;;  %v393_v60 = vld [vmem:[#allocation8 + $0x78] sm:$0xff] }
  0xbd   :  { %1869 = vmatprep.subr.bf16.mxu1 %v1868_v31  ;;  %v204_v44 = vld [vmem:[#allocation5 + $0x1d0] sm:$0xff]  ;;  %v1884_v49 = vpack.c.bf16 %v399_v41, %v395_v40  ;;  %v406_v63 = vld [vmem:[#allocation8 + $0xe0] sm:$0xff]  ;;  %v2006_v2 = vpack.c.bf16 %v384_v57, %v380_v56  ;;  %v2008_v3 = vpack.c.bf16 %v393_v60, %v389_v58  ;;  %v401_v8 = vld [vmem:[#allocation8 + $0xb8] sm:$0xff] }
  0xbe   :  { %1839 = vmatpush1.bf16.msra.mxu0 %v1838_v6  ;;  %v208_v45 = vld [vmem:[#allocation5 + $0x1f0] sm:$0xff]  ;;  %v397_v6 = vld [vmem:[#allocation8 + $0x98] sm:$0xff]  ;;  %v1890_v7 = vpack.c.bf16 %v406_v63, %v402_v62  ;;  %v418_v22 = vld [vmem:[#allocation8 + $0x140] sm:$0xff] }
  0xbf   :  { %1841 = vmatprep.subr.bf16.mxu0 %v1840_v11  ;;  %v403_v52 = vld [vmem:[#allocation8 + $0xc8] sm:$0xff]  ;;  %v1874_v54 = vpack.c.bf16 %v208_v45, %v204_v44  ;;  %v388_v4 = vld [vmem:[#allocation8 + $0x50] sm:$0xff]  ;;  %v414_v11 = vld [vmem:[#allocation8 + $0x120] sm:$0xff]  ;;  %v2012_v15 = vpack.c.bf16 %v401_v8, %v397_v6 }
  0xc0   :  { %v407_v53 = vld [vmem:[#allocation8 + $0xe8] sm:$0xff]  ;;  %1871 = vmatpush1.bf16.msra.mxu1 %v1870_v42  ;;  %v392_v5 = vld [vmem:[#allocation8 + $0x70] sm:$0xff]  ;;  %v1894_v19 = vpack.c.bf16 %v414_v11, %v410_v10  ;;  %v409_v20 = vld [vmem:[#allocation8 + $0xf8] sm:$0xff] }
  0xc1   :  { %1873 = vmatprep.subr.bf16.mxu1 %v1872_v43  ;;  %v1888_v61 = vpack.c.bf16 %v407_v53, %v403_v52  ;;  %v411_v0 = vld [vmem:[#allocation8 + $0x108] sm:$0xff]  ;;  %v2010_v14 = vpack.c.bf16 %v392_v5, %v388_v4  ;;  %v396_v16 = vld [vmem:[#allocation8 + $0x90] sm:$0xff]  ;;  %v422_v23 = vld [vmem:[#allocation8 + $0x160] sm:$0xff] }
  0xc2   :  { %1843 = vmatpush1.bf16.msra.mxu0 %v1842_v18  ;;  %v415_v1 = vld [vmem:[#allocation8 + $0x128] sm:$0xff]  ;;  %v400_v17 = vld [vmem:[#allocation8 + $0xb0] sm:$0xff]  ;;  %v405_v18 = vld [vmem:[#allocation8 + $0xd8] sm:$0xff]  ;;  %v1898_v31 = vpack.c.bf16 %v422_v23, %v418_v22 }
  0xc3   :  { %1877 = vmatprep.subr.bf16.mxu0 %v1876_v24  ;;  %v1892_v9 = vpack.c.bf16 %v415_v1, %v411_v0  ;;  %v419_v12 = vld [vmem:[#allocation8 + $0x148] sm:$0xff]  ;;  %v2014_v26 = vpack.c.bf16 %v400_v17, %v396_v16  ;;  %v2016_v27 = vpack.c.bf16 %v409_v20, %v405_v18  ;;  %v404_v28 = vld [vmem:[#allocation8 + $0xd0] sm:$0xff]  ;;  %v413_v30 = vld [vmem:[#allocation8 + $0x118] sm:$0xff] }
  0xc4   :  { %1875 = vmatpush1.bf16.msra.mxu1 %v1874_v54  ;;  %v423_v13 = vld [vmem:[#allocation8 + $0x168] sm:$0xff]  ;;  %v417_v32 = vld [vmem:[#allocation8 + $0x138] sm:$0xff]  ;;  %v426_v34 = vld [vmem:[#allocation8 + $0x180] sm:$0xff] }
  0xc5   :  { %297 = vmatmul.mubr.f32.vlgmr.msra.gmra.mrb[0].mxu0 %v2897_v29  ;;  %2005 = vmatprep.subr.bf16.mxu1 %v2004_v55  ;;  %v1896_v21 = vpack.c.bf16 %v423_v13, %v419_v12  ;;  %v427_v24 = vld [vmem:[#allocation8 + $0x188] sm:$0xff]  ;;  %v2020_v39 = vpack.c.bf16 %v417_v32, %v413_v30  ;;  %v412_v40 = vld [vmem:[#allocation8 + $0x110] sm:$0xff]  ;;  %v421_v42 = vld [vmem:[#allocation8 + $0x158] sm:$0xff] }
  0xc6   :  { %1879 = vmatpush1.bf16.msra.mxu0 %v1878_v35  ;;  %v431_v25 = vld [vmem:[#allocation8 + $0x1a8] sm:$0xff]  ;;  %v430_v35 = vld [vmem:[#allocation8 + $0x1a0] sm:$0xff]  ;;  %v416_v41 = vld [vmem:[#allocation8 + $0x130] sm:$0xff] }
  0xc7   :  { %1881 = vmatprep.subr.bf16.mxu0 %v1880_v37  ;;  %368 = vmatmul.mubr.f32.vlgmr.msra.gmra.mrb[0].mxu1 %v2897_v29  ;;  %v408_v29 = vld [vmem:[#allocation8 + $0xf0] sm:$0xff]  ;;  %v1900_v33 = vpack.c.bf16 %v431_v25, %v427_v24  ;;  %v435_v36 = vld [vmem:[#allocation8 + $0x1c8] sm:$0xff]  ;;  %v1902_v43 = vpack.c.bf16 %v430_v35, %v426_v34  ;;  %v425_v44 = vld [vmem:[#allocation8 + $0x178] sm:$0xff]  ;;  %v2022_v50 = vpack.c.bf16 %v416_v41, %v412_v40 }
  0xc8   :  { %2007 = vmatpush1.bf16.msra.mxu1 %v2006_v2  ;;  %v439_v37 = vld [vmem:[#allocation8 + $0x1e8] sm:$0xff]  ;;  %v2018_v38 = vpack.c.bf16 %v408_v29, %v404_v28  ;;  %v434_v46 = vld [vmem:[#allocation8 + $0x1c0] sm:$0xff]  ;;  %v2024_v51 = vpack.c.bf16 %v425_v44, %v421_v42  ;;  %v420_v52 = vld [vmem:[#allocation8 + $0x150] sm:$0xff] }
  0xc9   :  { %2009 = vmatprep.subr.bf16.mxu1 %v2008_v3  ;;  %v1904_v45 = vpack.c.bf16 %v439_v37, %v435_v36  ;;  %v443_v48 = vld [vmem:[#allocation8 + $0x208] sm:$0xff]  ;;  %v424_v53 = vld [vmem:[#allocation8 + $0x170] sm:$0xff]  ;;  %v429_v54 = vld [vmem:[#allocation8 + $0x198] sm:$0xff] }
  0xca   :  { %1883 = vmatpush1.bf16.msra.mxu0 %v1882_v47  ;;  %v438_v47 = vld [vmem:[#allocation8 + $0x1e0] sm:$0xff]  ;;  %v433_v56 = vld [vmem:[#allocation8 + $0x1b8] sm:$0xff]  ;;  %v451_v60 = vld [vmem:[#allocation8 + $0x248] sm:$0xff]  ;;  %v2026_v62 = vpack.c.bf16 %v424_v53, %v420_v52 }
  0xcb   :  { %1885 = vmatprep.subr.bf16.mxu0 %v1884_v49  ;;  %v447_v49 = vld [vmem:[#allocation8 + $0x228] sm:$0xff]  ;;  %v1906_v55 = vpack.c.bf16 %v438_v47, %v434_v46  ;;  %v442_v58 = vld [vmem:[#allocation8 + $0x200] sm:$0xff]  ;;  %v2028_v63 = vpack.c.bf16 %v433_v56, %v429_v54  ;;  %v428_v0 = vld [vmem:[#allocation8 + $0x190] sm:$0xff] }
  0xcc   :  { %2011 = vmatpush1.bf16.msra.mxu1 %v2010_v14  ;;  %v1908_v57 = vpack.c.bf16 %v447_v49, %v443_v48  ;;  %v432_v1 = vld [vmem:[#allocation8 + $0x1b0] sm:$0xff]  ;;  %v437_v2 = vld [vmem:[#allocation8 + $0x1d8] sm:$0xff]  ;;  %v450_v6 = vld [vmem:[#allocation8 + $0x240] sm:$0xff] }
  0xcd   :  { %2013 = vmatprep.subr.bf16.mxu1 %v2012_v15  ;;  %v441_v4 = vld [vmem:[#allocation8 + $0x1f8] sm:$0xff]  ;;  %v459_v8 = vld [vmem:[#allocation8 + $0x288] sm:$0xff]  ;;  %v2030_v10 = vpack.c.bf16 %v432_v1, %v428_v0  ;;  %v436_v12 = vld [vmem:[#allocation8 + $0x1d0] sm:$0xff] }
  0xce   :  { %1887 = vmatpush1.bf16.msra.mxu0 %v1886_v59  ;;  %v446_v59 = vld [vmem:[#allocation8 + $0x220] sm:$0xff]  ;;  %v2032_v11 = vpack.c.bf16 %v441_v4, %v437_v2  ;;  %v440_v13 = vld [vmem:[#allocation8 + $0x1f0] sm:$0xff]  ;;  %v445_v14 = vld [vmem:[#allocation8 + $0x218] sm:$0xff] }
  0xcf   :  { %1889 = vmatprep.subr.bf16.mxu0 %v1888_v61  ;;  %v455_v61 = vld [vmem:[#allocation8 + $0x268] sm:$0xff]  ;;  %v1910_v3 = vpack.c.bf16 %v446_v59, %v442_v58  ;;  %v449_v16 = vld [vmem:[#allocation8 + $0x238] sm:$0xff]  ;;  %v458_v18 = vld [vmem:[#allocation8 + $0x280] sm:$0xff]  ;;  %v2034_v22 = vpack.c.bf16 %v440_v13, %v436_v12 }
  0xd0   :  { %2015 = vmatpush1.bf16.msra.mxu1 %v2014_v26  ;;  %v1912_v5 = vpack.c.bf16 %v455_v61, %v451_v60  ;;  %v467_v20 = vld [vmem:[#allocation8 + $0x2c8] sm:$0xff]  ;;  %v2036_v23 = vpack.c.bf16 %v449_v16, %v445_v14  ;;  %v444_v24 = vld [vmem:[#allocation8 + $0x210] sm:$0xff]  ;;  %v453_v26 = vld [vmem:[#allocation8 + $0x258] sm:$0xff] }
  0xd1   :  { %2017 = vmatprep.subr.bf16.mxu1 %v2016_v27  ;;  %v448_v25 = vld [vmem:[#allocation8 + $0x230] sm:$0xff]  ;;  %v457_v28 = vld [vmem:[#allocation8 + $0x278] sm:$0xff]  ;;  %v466_v30 = vld [vmem:[#allocation8 + $0x2c0] sm:$0xff] }
  0xd2   :  { %1891 = vmatpush1.bf16.msra.mxu0 %v1890_v7  ;;  %v454_v7 = vld [vmem:[#allocation8 + $0x260] sm:$0xff]  ;;  %v475_v32 = vld [vmem:[#allocation8 + $0x308] sm:$0xff]  ;;  %v2038_v34 = vpack.c.bf16 %v448_v25, %v444_v24  ;;  %v2040_v35 = vpack.c.bf16 %v457_v28, %v453_v26  ;;  %v452_v36 = vld [vmem:[#allocation8 + $0x250] sm:$0xff] }
  0xd3   :  { %1893 = vmatprep.subr.bf16.mxu0 %v1892_v9  ;;  %v463_v9 = vld [vmem:[#allocation8 + $0x2a8] sm:$0xff]  ;;  %v1914_v15 = vpack.c.bf16 %v454_v7, %v450_v6  ;;  %v456_v37 = vld [vmem:[#allocation8 + $0x270] sm:$0xff]  ;;  %v465_v40 = vld [vmem:[#allocation8 + $0x2b8] sm:$0xff] }
  0xd4   :  { %2019 = vmatpush1.bf16.msra.mxu1 %v2018_v38  ;;  %v1916_v17 = vpack.c.bf16 %v463_v9, %v459_v8  ;;  %v461_v38 = vld [vmem:[#allocation8 + $0x298] sm:$0xff]  ;;  %v474_v42 = vld [vmem:[#allocation8 + $0x300] sm:$0xff]  ;;  %v483_v44 = vld [vmem:[#allocation8 + $0x348] sm:$0xff]  ;;  %v2042_v46 = vpack.c.bf16 %v456_v37, %v452_v36 }
  0xd5   :  { %2021 = vmatprep.subr.bf16.mxu1 %v2020_v39  ;;  %v2044_v47 = vpack.c.bf16 %v465_v40, %v461_v38  ;;  %v460_v48 = vld [vmem:[#allocation8 + $0x290] sm:$0xff]  ;;  %v473_v52 = vld [vmem:[#allocation8 + $0x2f8] sm:$0xff]  ;;  %v482_v54 = vld [vmem:[#allocation8 + $0x340] sm:$0xff]  ;;  %v212_v40 = vlaneseq }
  0xd6   :  { %1895 = vmatpush1.bf16.msra.mxu0 %v1894_v19  ;;  %v462_v19 = vld [vmem:[#allocation8 + $0x2a0] sm:$0xff]  ;;  %v464_v49 = vld [vmem:[#allocation8 + $0x2b0] sm:$0xff]  ;;  %v491_v56 = vld [vmem:[#allocation8 + $0x388] sm:$0xff] }
  0xd7   :  { %1897 = vmatprep.subr.bf16.mxu0 %v1896_v21  ;;  %v471_v21 = vld [vmem:[#allocation8 + $0x2e8] sm:$0xff]  ;;  %v1918_v27 = vpack.c.bf16 %v462_v19, %v458_v18  ;;  %v2046_v58 = vpack.c.bf16 %v464_v49, %v460_v48  ;;  %v468_v60 = vld [vmem:[#allocation8 + $0x2d0] sm:$0xff]  ;;  %v481_v0 = vld [vmem:[#allocation8 + $0x338] sm:$0xff] }
  0xd8   :  { %2023 = vmatpush1.bf16.msra.mxu1 %v2022_v50  ;;  %v1920_v29 = vpack.c.bf16 %v471_v21, %v467_v20  ;;  %v469_v50 = vld [vmem:[#allocation8 + $0x2d8] sm:$0xff]  ;;  %v472_v61 = vld [vmem:[#allocation8 + $0x2f0] sm:$0xff]  ;;  %v490_v2 = vld [vmem:[#allocation8 + $0x380] sm:$0xff] }
  0xd9   :  { %2025 = vmatprep.subr.bf16.mxu1 %v2024_v51  ;;  %v2048_v59 = vpack.c.bf16 %v473_v52, %v469_v50  ;;  %v2050_v4 = vpack.c.bf16 %v472_v61, %v468_v60  ;;  %v476_v6 = vld [vmem:[#allocation8 + $0x310] sm:$0xff]  ;;  %v485_v9 = vld [vmem:[#allocation8 + $0x358] sm:$0xff]  ;;  %v502_v28 = vld [vmem:[#allocation8 + $0x3e0] sm:$0xff] }
  0xda   :  { %1899 = vmatpush1.bf16.msra.mxu0 %v1898_v31  ;;  %v470_v31 = vld [vmem:[#allocation8 + $0x2e0] sm:$0xff]  ;;  %v480_v7 = vld [vmem:[#allocation8 + $0x330] sm:$0xff]  ;;  %v497_v16 = vld [vmem:[#allocation8 + $0x3b8] sm:$0xff] }
  0xdb   :  { %1901 = vmatprep.subr.bf16.mxu0 %v1900_v33  ;;  %v479_v33 = vld [vmem:[#allocation8 + $0x328] sm:$0xff]  ;;  %v1922_v39 = vpack.c.bf16 %v470_v31, %v466_v30  ;;  %v484_v13 = vld [vmem:[#allocation8 + $0x350] sm:$0xff]  ;;  %v501_v24 = vld [vmem:[#allocation8 + $0x3d8] sm:$0xff] }
  0xdc   :  { %2027 = vmatpush1.bf16.msra.mxu1 %v2026_v62  ;;  %v1924_v41 = vpack.c.bf16 %v479_v33, %v475_v32  ;;  %v477_v62 = vld [vmem:[#allocation8 + $0x318] sm:$0xff]  ;;  %v488_v14 = vld [vmem:[#allocation8 + $0x370] sm:$0xff]  ;;  %v506_v48 = vld [vmem:[#allocation8 + $0x400] sm:$0xff] }
  0xdd   :  { %2029 = vmatprep.subr.bf16.mxu1 %v2028_v63  ;;  %v492_v19 = vld [vmem:[#allocation8 + $0x390] sm:$0xff]  ;;  %v505_v26 = vld [vmem:[#allocation8 + $0x3f8] sm:$0xff]  ;;  %v510_v49 = vld [vmem:[#allocation8 + $0x420] sm:$0xff] }
  0xde   :  { %1903 = vmatpush1.bf16.msra.mxu0 %v1902_v43  ;;  %v478_v43 = vld [vmem:[#allocation8 + $0x320] sm:$0xff]  ;;  %v496_v20 = vld [vmem:[#allocation8 + $0x3b0] sm:$0xff]  ;;  %v509_v36 = vld [vmem:[#allocation8 + $0x418] sm:$0xff]  ;;  %v1942_v60 = vpack.c.bf16 %v510_v49, %v506_v48 }
  0xdf   :  { %1905 = vmatprep.subr.bf16.mxu0 %v1904_v45  ;;  %v487_v45 = vld [vmem:[#allocation8 + $0x368] sm:$0xff]  ;;  %v1926_v51 = vpack.c.bf16 %v478_v43, %v474_v42  ;;  %v2062_v21 = vpack.c.bf16 %v496_v20, %v492_v19  ;;  %v500_v31 = vld [vmem:[#allocation8 + $0x3d0] sm:$0xff]  ;;  %v513_v38 = vld [vmem:[#allocation8 + $0x438] sm:$0xff] }
  0xe0   :  { %2031 = vmatpush1.bf16.msra.mxu1 %v2030_v10  ;;  %v1928_v53 = vpack.c.bf16 %v487_v45, %v483_v44  ;;  %v489_v10 = vld [vmem:[#allocation8 + $0x378] sm:$0xff]  ;;  %v504_v32 = vld [vmem:[#allocation8 + $0x3f0] sm:$0xff]  ;;  %v535_v20 = vld [vmem:[#allocation8 + $0x4e8] sm:$0xff] }
  0xe1   :  { %2033 = vmatprep.subr.bf16.mxu1 %v2032_v11  ;;  %v2054_v11 = vpack.c.bf16 %v480_v7, %v476_v6  ;;  %v2056_v12 = vpack.c.bf16 %v489_v10, %v485_v9  ;;  %v2066_v33 = vpack.c.bf16 %v504_v32, %v500_v31  ;;  %v2906_v43 = vld [vmem:[#allocation7] sm:$0xf]  ;;  %v508_v52 = vld [vmem:[#allocation8 + $0x410] sm:$0xff]  ;;  %v527_v7 = vld [vmem:[#allocation8 + $0x4a8] sm:$0xff] }
  0xe2   :  { %1907 = vmatpush1.bf16.msra.mxu0 %v1906_v55  ;;  %v486_v55 = vld [vmem:[#allocation8 + $0x360] sm:$0xff]  ;;  %v529_v9 = vld [vmem:[#allocation8 + $0x4b8] sm:$0xff]  ;;  %v532_v31 = vld [vmem:[#allocation8 + $0x4d0] sm:$0xff] }
  0xe3   :  { %1909 = vmatprep.subr.bf16.mxu0 %v1908_v57  ;;  %v495_v57 = vld [vmem:[#allocation8 + $0x3a8] sm:$0xff]  ;;  %v1930_v63 = vpack.c.bf16 %v486_v55, %v482_v54  ;;  %v536_v32 = vld [vmem:[#allocation8 + $0x4f0] sm:$0xff] }
  0xe4   :  { %2035 = vmatpush1.bf16.msra.mxu1 %v2034_v22  ;;  %v1932_v1 = vpack.c.bf16 %v495_v57, %v491_v56  ;;  %v499_v22 = vld [vmem:[#allocation8 + $0x3c8] sm:$0xff]  ;;  %v517_v57 = vld [vmem:[#allocation8 + $0x458] sm:$0xff]  ;;  %v540_v49 = vld [vmem:[#allocation8 + $0x510] sm:$0xff] }
  0xe5   :  { %2037 = vmatprep.subr.bf16.mxu1 %v2036_v23  ;;  %v503_v23 = vld [vmem:[#allocation8 + $0x3e8] sm:$0xff] }
  0xe6   :  { %1911 = vmatpush1.bf16.msra.mxu0 %v1910_v3  ;;  %v494_v3 = vld [vmem:[#allocation8 + $0x3a0] sm:$0xff]  ;;  %v1936_v25 = vpack.c.bf16 %v503_v23, %v499_v22  ;;  %v515_v54 = vld [vmem:[#allocation8 + $0x448] sm:$0xff]  ;;  %v537_v22 = vld [vmem:[#allocation8 + $0x4f8] sm:$0xff] }
  0xe7   :  { %1913 = vmatprep.subr.bf16.mxu0 %v1912_v5  ;;  %v2052_v5 = vpack.c.bf16 %v481_v0, %v477_v62  ;;  %v1934_v8 = vpack.c.bf16 %v494_v3, %v490_v2  ;;  %v519_v56 = vld [vmem:[#allocation8 + $0x468] sm:$0xff]  ;;  %v514_v62 = vld [vmem:[#allocation8 + $0x440] sm:$0xff]  ;;  %v516_v3 = vld [vmem:[#allocation8 + $0x450] sm:$0xff] }
  0xe8   :  { %2039 = vmatpush1.bf16.msra.mxu1 %v2038_v34  ;;  %v507_v34 = vld [vmem:[#allocation8 + $0x408] sm:$0xff] }
  0xe9   :  { %2041 = vmatprep.subr.bf16.mxu1 %v2040_v35  ;;  %v511_v35 = vld [vmem:[#allocation8 + $0x428] sm:$0xff] }
  0xea   :  { %1915 = vmatpush1.bf16.msra.mxu0 %v1914_v15  ;;  %v493_v15 = vld [vmem:[#allocation8 + $0x398] sm:$0xff]  ;;  %v1940_v37 = vpack.c.bf16 %v511_v35, %v507_v34  ;;  %v543_v35 = vld [vmem:[#allocation8 + $0x528] sm:$0xff] }
  0xeb   :  { %1917 = vmatprep.subr.bf16.mxu0 %v1916_v17  ;;  %v2058_v17 = vpack.c.bf16 %v488_v14, %v484_v13  ;;  %v2060_v18 = vpack.c.bf16 %v497_v16, %v493_v15  ;;  %v526_v13 = vld [vmem:[#allocation8 + $0x4a0] sm:$0xff]  ;;  %v524_v16 = vld [vmem:[#allocation8 + $0x490] sm:$0xff] }
  0xec   :  { %2043 = vmatpush1.bf16.msra.mxu1 %v2042_v46 }
  0xed   :  { %2045 = vmatprep.subr.bf16.mxu1 %v2044_v47 }
  0xee   :  { %1919 = vmatpush1.bf16.msra.mxu0 %v1918_v27  ;;  %v498_v27 = vld [vmem:[#allocation8 + $0x3c0] sm:$0xff] }
  0xef   :  { %1921 = vmatprep.subr.bf16.mxu0 %v1920_v29  ;;  %v2064_v29 = vpack.c.bf16 %v505_v26, %v501_v24  ;;  %v1938_v30 = vpack.c.bf16 %v502_v28, %v498_v27  ;;  %v530_v26 = vld [vmem:[#allocation8 + $0x4c0] sm:$0xff] }
  0xf0   :  { %2047 = vmatpush1.bf16.msra.mxu1 %v2046_v58  ;;  %v521_v58 = vld [vmem:[#allocation8 + $0x478] sm:$0xff]  ;;  %v534_v27 = vld [vmem:[#allocation8 + $0x4e0] sm:$0xff] }
  0xf1   :  { %2049 = vmatprep.subr.bf16.mxu1 %v2048_v59  ;;  %v2072_v2 = vpack.c.bf16 %v521_v58, %v517_v57  ;;  %v546_v57 = vld [vmem:[#allocation8 + $0x540] sm:$0xff] }
  0xf2   :  { %1923 = vmatpush1.bf16.msra.mxu0 %v1922_v39  ;;  %v2068_v39 = vpack.c.bf16 %v513_v38, %v509_v36  ;;  %v541_v36 = vld [vmem:[#allocation8 + $0x518] sm:$0xff]  ;;  %v550_v58 = vld [vmem:[#allocation8 + $0x560] sm:$0xff] }
  0xf3   :  { %1925 = vmatprep.subr.bf16.mxu0 %v1924_v41  ;;  %v2901_v41 = vshrl.u32 %v212_v40, 7  ;;  %v2082_v40 = vpack.c.bf16 %v536_v32, %v532_v31  ;;  %v570_v31 = vld [vmem:[#allocation8 + $0x600] sm:$0xff] }
  0xf4   :  { %2051 = vmatpush1.bf16.msra.mxu1 %v2050_v4  ;;  %v520_v4 = vld [vmem:[#allocation8 + $0x470] sm:$0xff]  ;;  %v574_v32 = vld [vmem:[#allocation8 + $0x620] sm:$0xff] }
  0xf5   :  { %2053 = vmatprep.subr.bf16.mxu1 %v2052_v5  ;;  %v2904_v42 = vsub.s32 0, %v2901_v41  ;;  %v2909_v44 = vsub.s32 1, %v2901_v41  ;;  %v523_v5 = vld [vmem:[#allocation8 + $0x488] sm:$0xff]  ;;  %v2916_v6 = vsub.s32 3, %v2901_v41 }
  0xf6   :  { %1927 = vmatpush1.bf16.msra.mxu0 %v1926_v51  ;;  %v1948_v14 = vpack.c.bf16 %v527_v7, %v523_v5  ;;  %v554_v5 = vld [vmem:[#allocation8 + $0x580] sm:$0xff] }
  0xf7   :  { %1929 = vmatprep.subr.bf16.mxu0 %v1928_v53  ;;  %v215_v45 = vrot.slane %v2906_v43, %v2904_v42  ;;  %v219_v46 = vrot.slane %v2906_v43, %v2909_v44  ;;  %v512_v53 = vld [vmem:[#allocation8 + $0x430] sm:$0xff]  ;;  %v227_v19 = vrot.slane %v2906_v43, %v2916_v6  ;;  %v558_v7 = vld [vmem:[#allocation8 + $0x5a0] sm:$0xff] }
  0xf8   :  { %2055 = vmatpush1.bf16.msra.mxu1 %v2054_v11  ;;  %v2070_v61 = vpack.c.bf16 %v512_v53, %v508_v52  ;;  %v2074_v11 = vpack.c.bf16 %v520_v4, %v516_v3  ;;  %v551_v52 = vld [vmem:[#allocation8 + $0x568] sm:$0xff]  ;;  %v549_v53 = vld [vmem:[#allocation8 + $0x558] sm:$0xff]  ;;  %v1962_v3 = vpack.c.bf16 %v550_v58, %v546_v57 }
  0xf9   :  { %2057 = vmatprep.subr.bf16.mxu1 %v2056_v12  ;;  %v522_v12 = vld [vmem:[#allocation8 + $0x480] sm:$0xff] }
  0xfa   :  { %1931 = vmatpush1.bf16.msra.mxu0 %v1930_v63  ;;  %v518_v63 = vld [vmem:[#allocation8 + $0x460] sm:$0xff]  ;;  %v1950_v24 = vpack.c.bf16 %v526_v13, %v522_v12  ;;  %v563_v12 = vld [vmem:[#allocation8 + $0x5c8] sm:$0xff] }
  0xfb   :  { %1933 = vmatprep.subr.bf16.mxu0 %v1932_v1  ;;  %v1944_v1 = vpack.c.bf16 %v519_v56, %v515_v54  ;;  %v1946_v10 = vpack.c.bf16 %v518_v63, %v514_v62  ;;  %v553_v54 = vld [vmem:[#allocation8 + $0x578] sm:$0xff]  ;;  %v552_v62 = vld [vmem:[#allocation8 + $0x570] sm:$0xff]  ;;  %v555_v63 = vld [vmem:[#allocation8 + $0x588] sm:$0xff] }
  0xfc   :  { %2059 = vmatpush1.bf16.msra.mxu1 %v2058_v17  ;;  %v528_v17 = vld [vmem:[#allocation8 + $0x4b0] sm:$0xff]  ;;  %v567_v13 = vld [vmem:[#allocation8 + $0x5e8] sm:$0xff] }
  0xfd   :  { %2061 = vmatprep.subr.bf16.mxu1 %v2060_v18  ;;  %v531_v18 = vld [vmem:[#allocation8 + $0x4c8] sm:$0xff] }
  0xfe   :  { %1935 = vmatpush1.bf16.msra.mxu0 %v1934_v8  ;;  %v525_v8 = vld [vmem:[#allocation8 + $0x498] sm:$0xff] }
  0xff   :  { %1937 = vmatprep.subr.bf16.mxu0 %v1936_v25  ;;  %v2076_v15 = vpack.c.bf16 %v529_v9, %v525_v8  ;;  %v2078_v25 = vpack.c.bf16 %v528_v17, %v524_v16  ;;  %v1966_v16 = vpack.c.bf16 %v558_v7, %v554_v5 }
 0x100   :  { %2063 = vmatpush1.bf16.msra.mxu1 %v2062_v21  ;;  %v533_v21 = vld [vmem:[#allocation8 + $0x4d8] sm:$0xff] }
 0x101   :  { %2065 = vmatprep.subr.bf16.mxu1 %v2064_v29  ;;  %v1952_v29 = vpack.c.bf16 %v535_v20, %v531_v18  ;;  %v562_v18 = vld [vmem:[#allocation8 + $0x5c0] sm:$0xff]  ;;  %v1968_v20 = vpack.c.bf16 %v567_v13, %v563_v12  ;;  %v596_v12 = vld [vmem:[#allocation8 + $0x6d0] sm:$0xff] }
 0x102   :  { %1939 = vmatpush1.bf16.msra.mxu0 %v1938_v30  ;;  %v2080_v30 = vpack.c.bf16 %v537_v22, %v533_v21  ;;  %v564_v22 = vld [vmem:[#allocation8 + $0x5d0] sm:$0xff] }
 0x103   :  { %1941 = vmatprep.subr.bf16.mxu0 %v1940_v37  ;;  %v545_v37 = vld [vmem:[#allocation8 + $0x538] sm:$0xff]  ;;  %v600_v13 = vld [vmem:[#allocation8 + $0x6f0] sm:$0xff] }
 0x104   :  { %2067 = vmatpush1.bf16.msra.mxu1 %v2066_v33  ;;  %v539_v33 = vld [vmem:[#allocation8 + $0x508] sm:$0xff]  ;;  %v2084_v48 = vpack.c.bf16 %v545_v37, %v541_v36  ;;  %v576_v36 = vld [vmem:[#allocation8 + $0x630] sm:$0xff] }
 0x105   :  { %2069 = vmatprep.subr.bf16.mxu1 %v2068_v39  ;;  %v1954_v39 = vpack.c.bf16 %v534_v27, %v530_v26  ;;  %v575_v26 = vld [vmem:[#allocation8 + $0x628] sm:$0xff]  ;;  %v573_v27 = vld [vmem:[#allocation8 + $0x618] sm:$0xff] }
 0x106   :  { %v579_v37 = vld [vmem:[#allocation8 + $0x648] sm:$0xff] }
 0x198   :  { %v298_v47 = vpop.f32.mrb[0].mxu0 }
 0x199   :  { %v299_v50 = vadd.f32 %v298_v47, %v215_v45  ;;  %v300_v51 = vpop.f32.mrb[1].mxu0  ;;  %v538_v45 = vld [vmem:[#allocation8 + $0x500] sm:$0xff]  ;;  %v1956_v47 = vpack.c.bf16 %v543_v35, %v539_v33  ;;  %v572_v35 = vld [vmem:[#allocation8 + $0x610] sm:$0xff] }
 0x19a   :  { %v301_v55 = vadd.f32 %v300_v51, %v219_v46  ;;  %v2920_v23 = vpop.f32.mrb[0].mxu1  ;;  %v542_v46 = vld [vmem:[#allocation8 + $0x520] sm:$0xff]  ;;  %v547_v51 = vld [vmem:[#allocation8 + $0x548] sm:$0xff] }
 0x19b   :  { %v374_v0 = vmax.f32 %v299_v50, 0.0  ;;  %v371_v28 = vpop.f32.mrb[1].mxu1  ;;  %v544_v50 = vld [vmem:[#allocation8 + $0x530] sm:$0xff] }
 0x19c   :  { %v375_v59 = vmax.f32 %v301_v55, 0.0  ;;  %v372_v34 = vadd.f32 %v371_v28, %v227_v19  ;;  %v1958_v55 = vpack.c.bf16 %v542_v46, %v538_v45  ;;  %v2086_v56 = vpack.c.bf16 %v544_v50, %v540_v49  ;;  %v566_v19 = vld [vmem:[#allocation8 + $0x5e0] sm:$0xff]  ;;  %v577_v28 = vld [vmem:[#allocation8 + $0x638] sm:$0xff] }
 0x19d   :  { %v1974_v45 = vpack.c.bf16 %v574_v32, %v570_v31  ;;  %v2102_v46 = vpack.c.bf16 %v576_v36, %v572_v35 }
 0x19e   :  { %720 = vmatprep.mubr.f32.mxu0 %v375_v59  ;;  %862 = vmatprep.mubr.f32.mxu1 %v375_v59  ;;  %v377_v38 = vmax.f32 %v372_v34, 0.0  ;;  %v1960_v59 = vpack.c.bf16 %v551_v52, %v547_v51  ;;  %v2100_v34 = vpack.c.bf16 %v577_v28, %v573_v27  ;;  %v580_v51 = vld [vmem:[#allocation8 + $0x650] sm:$0xff]  ;;  %v611_v27 = vld [vmem:[#allocation8 + $0x748] sm:$0xff] }
 0x19f   :  { %721 = vmatmul.mubr.f32.vlgmr.msra.gmra.mrb[2].mxu0 %v374_v0  ;;  %863 = vmatmul.mubr.f32.vlgmr.msra.gmra.mrb[2].mxu1 %v374_v0  ;;  %v559_v0 = vld [vmem:[#allocation8 + $0x5a8] sm:$0xff]  ;;  %v584_v52 = vld [vmem:[#allocation8 + $0x670] sm:$0xff] }
 0x1a0   :  { %1943 = vmatpush1.bf16.msra.mxu0 %v1942_v60  ;;  %2071 = vmatpush1.bf16.msra.mxu1 %v2070_v61  ;;  %v2088_v60 = vpack.c.bf16 %v553_v54, %v549_v53  ;;  %v548_v61 = vld [vmem:[#allocation8 + $0x550] sm:$0xff]  ;;  %v1964_v8 = vpack.c.bf16 %v559_v0, %v555_v63  ;;  %v587_v53 = vld [vmem:[#allocation8 + $0x688] sm:$0xff]  ;;  %v2106_v58 = vpack.c.bf16 %v584_v52, %v580_v51  ;;  %v2923_v51 = vsub.s32 2, %v2901_v41 }
 0x1a1   :  { %1945 = vmatprep.subr.bf16.mxu0 %v1944_v1  ;;  %2073 = vmatprep.subr.bf16.mxu1 %v2072_v2  ;;  %v557_v1 = vld [vmem:[#allocation8 + $0x598] sm:$0xff]  ;;  %v2090_v4 = vpack.c.bf16 %v552_v62, %v548_v61  ;;  %v591_v54 = vld [vmem:[#allocation8 + $0x6a8] sm:$0xff]  ;;  %v588_v63 = vld [vmem:[#allocation8 + $0x690] sm:$0xff] }
 0x1a2   :  { %791 = vmatprep.mubr.f32.mxu0 %v377_v38  ;;  %933 = vmatprep.mubr.f32.mxu1 %v377_v38  ;;  %v561_v2 = vld [vmem:[#allocation8 + $0x5b8] sm:$0xff]  ;;  %v583_v38 = vld [vmem:[#allocation8 + $0x668] sm:$0xff]  ;;  %v1980_v61 = vpack.c.bf16 %v591_v54, %v587_v53  ;;  %v592_v0 = vld [vmem:[#allocation8 + $0x6b0] sm:$0xff] }
 0x1a3   :  { %v2092_v9 = vpack.c.bf16 %v561_v2, %v557_v1  ;;  %v1976_v49 = vpack.c.bf16 %v583_v38, %v579_v37  ;;  %v595_v1 = vld [vmem:[#allocation8 + $0x6c8] sm:$0xff]  ;;  %v2110_v7 = vpack.c.bf16 %v592_v0, %v588_v63  ;;  %v612_v37 = vld [vmem:[#allocation8 + $0x750] sm:$0xff]  ;;  %v630_v63 = vld [vmem:[#allocation8 + $0x7e0] sm:$0xff]  ;;  %v223_v0 = vrot.slane %v2906_v43, %v2923_v51 }
 0x1a4   :  { %1947 = vmatpush1.bf16.msra.mxu0 %v1946_v10  ;;  %2075 = vmatpush1.bf16.msra.mxu1 %v2074_v11  ;;  %v556_v10 = vld [vmem:[#allocation8 + $0x590] sm:$0xff]  ;;  %v599_v2 = vld [vmem:[#allocation8 + $0x6e8] sm:$0xff] }
 0x1a5   :  { %1949 = vmatprep.subr.bf16.mxu0 %v1948_v14  ;;  %2077 = vmatprep.subr.bf16.mxu1 %v2076_v15  ;;  %v560_v11 = vld [vmem:[#allocation8 + $0x5b0] sm:$0xff]  ;;  %v565_v14 = vld [vmem:[#allocation8 + $0x5d8] sm:$0xff]  ;;  %v615_v28 = vld [vmem:[#allocation8 + $0x768] sm:$0xff] }
 0x1a6   :  { %v569_v15 = vld [vmem:[#allocation8 + $0x5f8] sm:$0xff]  ;;  %v2094_v17 = vpack.c.bf16 %v560_v11, %v556_v10  ;;  %v1984_v10 = vpack.c.bf16 %v599_v2, %v595_v1  ;;  %v1992_v35 = vpack.c.bf16 %v615_v28, %v611_v27  ;;  %v616_v38 = vld [vmem:[#allocation8 + $0x770] sm:$0xff] }
 0x1a7   :  { %v2096_v21 = vpack.c.bf16 %v569_v15, %v565_v14  ;;  %v603_v14 = vld [vmem:[#allocation8 + $0x708] sm:$0xff]  ;;  %v620_v54 = vld [vmem:[#allocation8 + $0x790] sm:$0xff] }
 0x1a8   :  { %1951 = vmatpush1.bf16.msra.mxu0 %v1950_v24  ;;  %2079 = vmatpush1.bf16.msra.mxu1 %v2078_v25  ;;  %v568_v24 = vld [vmem:[#allocation8 + $0x5f0] sm:$0xff]  ;;  %v571_v25 = vld [vmem:[#allocation8 + $0x608] sm:$0xff] }
 0x1a9   :  { %1953 = vmatprep.subr.bf16.mxu0 %v1952_v29  ;;  %2081 = vmatprep.subr.bf16.mxu1 %v2080_v30  ;;  %v1970_v29 = vpack.c.bf16 %v566_v19, %v562_v18  ;;  %v2098_v30 = vpack.c.bf16 %v568_v24, %v564_v22  ;;  %v1972_v33 = vpack.c.bf16 %v575_v26, %v571_v25  ;;  %v607_v15 = vld [vmem:[#allocation8 + $0x728] sm:$0xff]  ;;  %v604_v25 = vld [vmem:[#allocation8 + $0x710] sm:$0xff] }
 0x1aa   :  { %v2114_v19 = vpack.c.bf16 %v600_v13, %v596_v12  ;;  %v1988_v22 = vpack.c.bf16 %v607_v15, %v603_v14  ;;  %v608_v26 = vld [vmem:[#allocation8 + $0x730] sm:$0xff]  ;;  %v948_v12 = vld [vmem:[#allocation11 + $0x20] sm:$0xff]  ;;  %v370_v13 = vadd.f32 %v2920_v23, %v223_v0 }
 0x1ab   :  { %v2118_v32 = vpack.c.bf16 %v608_v26, %v604_v25  ;;  %v628_v2 = vld [vmem:[#allocation8 + $0x7d0] sm:$0xff]  ;;  %v956_v25 = vld [vmem:[#allocation11 + $0x60] sm:$0xff] }
 0x1ac   :  { %1955 = vmatpush1.bf16.msra.mxu0 %v1954_v39  ;;  %2083 = vmatpush1.bf16.msra.mxu1 %v2082_v40  ;;  %v581_v39 = vld [vmem:[#allocation8 + $0x658] sm:$0xff]  ;;  %v376_v26 = vmax.f32 %v370_v13, 0.0  ;;  %v984_v13 = vld [vmem:[#allocation11 + $0x140] sm:$0xff] }
 0x1ad   :  { %1957 = vmatprep.subr.bf16.mxu0 %v1956_v47  ;;  %2085 = vmatprep.subr.bf16.mxu1 %v2084_v48  ;;  %v585_v40 = vld [vmem:[#allocation8 + $0x678] sm:$0xff]  ;;  %v578_v47 = vld [vmem:[#allocation8 + $0x640] sm:$0xff] }
 0x1ae   :  { %v582_v48 = vld [vmem:[#allocation8 + $0x660] sm:$0xff]  ;;  %v2104_v50 = vpack.c.bf16 %v585_v40, %v581_v39  ;;  %v619_v39 = vld [vmem:[#allocation8 + $0x788] sm:$0xff]  ;;  %v946_v15 = vld [vmem:[#allocation11 + $0x10] sm:$0xff] }
 0x1af   :  { %v1978_v57 = vpack.c.bf16 %v582_v48, %v578_v47  ;;  %v623_v40 = vld [vmem:[#allocation8 + $0x7a8] sm:$0xff]  ;;  %v2122_v48 = vpack.c.bf16 %v616_v38, %v612_v37  ;;  %v954_v28 = vld [vmem:[#allocation11 + $0x50] sm:$0xff] }
 0x1b0   :  { %1959 = vmatpush1.bf16.msra.mxu0 %v1958_v55  ;;  %2087 = vmatpush1.bf16.msra.mxu1 %v2086_v56  ;;  %v589_v55 = vld [vmem:[#allocation8 + $0x698] sm:$0xff]  ;;  %v1996_v52 = vpack.c.bf16 %v623_v40, %v619_v39  ;;  %v964_v37 = vld [vmem:[#allocation11 + $0xa0] sm:$0xff] }
 0x1b1   :  { %1961 = vmatprep.subr.bf16.mxu0 %v1960_v59  ;;  %2089 = vmatprep.subr.bf16.mxu1 %v2088_v60  ;;  %v593_v56 = vld [vmem:[#allocation8 + $0x6b8] sm:$0xff]  ;;  %v586_v59 = vld [vmem:[#allocation8 + $0x680] sm:$0xff] }
 0x1b2   :  { %v590_v60 = vld [vmem:[#allocation8 + $0x6a0] sm:$0xff]  ;;  %v2108_v62 = vpack.c.bf16 %v593_v56, %v589_v55  ;;  %v624_v55 = vld [vmem:[#allocation8 + $0x7b0] sm:$0xff]  ;;  %v627_v56 = vld [vmem:[#allocation8 + $0x7c8] sm:$0xff] }
 0x1b3   :  { %v1982_v5 = vpack.c.bf16 %v590_v60, %v586_v59  ;;  %v633_v59 = vld [vmem:[#allocation8 + $0x7f8] sm:$0xff] }
 0x1b4   :  { %1963 = vmatpush1.bf16.msra.mxu0 %v1962_v3  ;;  %2091 = vmatpush1.bf16.msra.mxu1 %v2090_v4  ;;  %v597_v3 = vld [vmem:[#allocation8 + $0x6d8] sm:$0xff] }
 0x1b5   :  { %1965 = vmatprep.subr.bf16.mxu0 %v1964_v8  ;;  %2093 = vmatprep.subr.bf16.mxu1 %v2092_v9  ;;  %v601_v4 = vld [vmem:[#allocation8 + $0x6f8] sm:$0xff]  ;;  %v594_v8 = vld [vmem:[#allocation8 + $0x6c0] sm:$0xff] }
 0x1b6   :  { %v598_v9 = vld [vmem:[#allocation8 + $0x6e0] sm:$0xff]  ;;  %v2112_v11 = vpack.c.bf16 %v601_v4, %v597_v3  ;;  %v632_v3 = vld [vmem:[#allocation8 + $0x7f0] sm:$0xff] }
 0x1b7   :  { %v1986_v18 = vpack.c.bf16 %v598_v9, %v594_v8  ;;  %v945_v4 = vld [vmem:[#allocation11 + $0x8] sm:$0xff]  ;;  %v951_v8 = vld [vmem:[#allocation11 + $0x38] sm:$0xff]  ;;  %v962_v40 = vld [vmem:[#allocation11 + $0x90] sm:$0xff] }
 0x1b8   :  { %1967 = vmatpush1.bf16.msra.mxu0 %v1966_v16  ;;  %2095 = vmatpush1.bf16.msra.mxu1 %v2094_v17  ;;  %v605_v16 = vld [vmem:[#allocation8 + $0x718] sm:$0xff] }
 0x1b9   :  { %1969 = vmatprep.subr.bf16.mxu0 %v1968_v20  ;;  %2097 = vmatprep.subr.bf16.mxu1 %v2096_v21  ;;  %v609_v17 = vld [vmem:[#allocation8 + $0x738] sm:$0xff]  ;;  %v602_v20 = vld [vmem:[#allocation8 + $0x700] sm:$0xff] }
 0x1ba   :  { %v606_v21 = vld [vmem:[#allocation8 + $0x720] sm:$0xff]  ;;  %v2116_v24 = vpack.c.bf16 %v609_v17, %v605_v16  ;;  %v950_v16 = vld [vmem:[#allocation11 + $0x30] sm:$0xff]  ;;  %v953_v17 = vld [vmem:[#allocation11 + $0x48] sm:$0xff] }
 0x1bb   :  { %v1990_v31 = vpack.c.bf16 %v606_v21, %v602_v20  ;;  %v959_v20 = vld [vmem:[#allocation11 + $0x78] sm:$0xff] }
 0x1bc   :  { %1971 = vmatpush1.bf16.msra.mxu0 %v1970_v29  ;;  %2099 = vmatpush1.bf16.msra.mxu1 %v2098_v30  ;;  %v613_v29 = vld [vmem:[#allocation8 + $0x758] sm:$0xff] }
 0x1bd   :  { %1973 = vmatprep.subr.bf16.mxu0 %v1972_v33  ;;  %2101 = vmatprep.subr.bf16.mxu1 %v2100_v34  ;;  %v617_v30 = vld [vmem:[#allocation8 + $0x778] sm:$0xff]  ;;  %v610_v33 = vld [vmem:[#allocation8 + $0x740] sm:$0xff] }
 0x1be   :  { %v614_v34 = vld [vmem:[#allocation8 + $0x760] sm:$0xff]  ;;  %v2120_v36 = vpack.c.bf16 %v617_v30, %v613_v29  ;;  %v958_v29 = vld [vmem:[#allocation11 + $0x70] sm:$0xff]  ;;  %v961_v30 = vld [vmem:[#allocation11 + $0x88] sm:$0xff] }
 0x1bf   :  { %v1994_v47 = vpack.c.bf16 %v614_v34, %v610_v33  ;;  %v967_v33 = vld [vmem:[#allocation11 + $0xb8] sm:$0xff] }
 0x1c0   :  { %1975 = vmatpush1.bf16.msra.mxu0 %v1974_v45  ;;  %2103 = vmatpush1.bf16.msra.mxu1 %v2102_v46  ;;  %v621_v45 = vld [vmem:[#allocation8 + $0x798] sm:$0xff] }
 0x1c1   :  { %1977 = vmatprep.subr.bf16.mxu0 %v1976_v49  ;;  %2105 = vmatprep.subr.bf16.mxu1 %v2104_v50  ;;  %v625_v46 = vld [vmem:[#allocation8 + $0x7b8] sm:$0xff]  ;;  %v618_v49 = vld [vmem:[#allocation8 + $0x780] sm:$0xff] }
 0x1c2   :  { %v622_v50 = vld [vmem:[#allocation8 + $0x7a0] sm:$0xff]  ;;  %v2124_v53 = vpack.c.bf16 %v625_v46, %v621_v45  ;;  %v966_v45 = vld [vmem:[#allocation11 + $0xb0] sm:$0xff]  ;;  %v969_v46 = vld [vmem:[#allocation11 + $0xc8] sm:$0xff] }
 0x1c3   :  { %v1998_v60 = vpack.c.bf16 %v622_v50, %v618_v49  ;;  %v975_v49 = vld [vmem:[#allocation11 + $0xf8] sm:$0xff] }
 0x1c4   :  { %1979 = vmatpush1.bf16.msra.mxu0 %v1978_v57  ;;  %2107 = vmatpush1.bf16.msra.mxu1 %v2106_v58  ;;  %v631_v57 = vld [vmem:[#allocation8 + $0x7e8] sm:$0xff]  ;;  %v629_v58 = vld [vmem:[#allocation8 + $0x7d8] sm:$0xff] }
 0x1c5   :  { %1981 = vmatprep.subr.bf16.mxu0 %v1980_v61  ;;  %2109 = vmatprep.subr.bf16.mxu1 %v2108_v62  ;;  %v2126_v61 = vpack.c.bf16 %v624_v55, %v620_v54  ;;  %v626_v62 = vld [vmem:[#allocation8 + $0x7c0] sm:$0xff]  ;;  %v2000_v41 = vpack.c.bf16 %v631_v57, %v627_v56  ;;  %v2128_v1 = vpack.c.bf16 %v633_v59, %v629_v58  ;;  %v970_v57 = vld [vmem:[#allocation11 + $0xd0] sm:$0xff]  ;;  %v977_v59 = vld [vmem:[#allocation11 + $0x108] sm:$0xff] }
 0x1c6   :  { %v2002_v9 = vpack.c.bf16 %v630_v63, %v626_v62  ;;  %v972_v54 = vld [vmem:[#allocation11 + $0xe0] sm:$0xff]  ;;  %v974_v58 = vld [vmem:[#allocation11 + $0xf0] sm:$0xff]  ;;  %v983_v62 = vld [vmem:[#allocation11 + $0x138] sm:$0xff] }
 0x1c7   :  { %v2274_v0 = vpack.c.bf16 %v974_v58, %v970_v57  ;;  %v1010_v57 = vld [vmem:[#allocation11 + $0x210] sm:$0xff] }
 0x1c8   :  { %1983 = vmatpush1.bf16.msra.mxu0 %v1982_v5  ;;  %2111 = vmatpush1.bf16.msra.mxu1 %v2110_v7  ;;  %v949_v5 = vld [vmem:[#allocation11 + $0x28] sm:$0xff]  ;;  %v947_v7 = vld [vmem:[#allocation11 + $0x18] sm:$0xff]  ;;  %v1014_v58 = vld [vmem:[#allocation11 + $0x230] sm:$0xff] }
 0x1c9   :  { %1985 = vmatprep.subr.bf16.mxu0 %v1984_v10  ;;  %2113 = vmatprep.subr.bf16.mxu1 %v2112_v11  ;;  %v2130_v10 = vpack.c.bf16 %v632_v3, %v628_v2  ;;  %v944_v11 = vld [vmem:[#allocation11] sm:$0xff]  ;;  %v2132_v43 = vpack.c.bf16 %v949_v5, %v945_v4  ;;  %v2260_v14 = vpack.c.bf16 %v951_v8, %v947_v7  ;;  %v978_v4 = vld [vmem:[#allocation11 + $0x110] sm:$0xff]  ;;  %v985_v7 = vld [vmem:[#allocation11 + $0x148] sm:$0xff] }
 0x1ca   :  { %v2134_v21 = vpack.c.bf16 %v948_v12, %v944_v11  ;;  %v982_v5 = vld [vmem:[#allocation11 + $0x130] sm:$0xff]  ;;  %v989_v8 = vld [vmem:[#allocation11 + $0x168] sm:$0xff] }
 0x1cb   :  { %v2278_v12 = vpack.c.bf16 %v982_v5, %v978_v4  ;;  %v1018_v4 = vld [vmem:[#allocation11 + $0x250] sm:$0xff] }
 0x1cc   :  { %1987 = vmatpush1.bf16.msra.mxu0 %v1986_v18  ;;  %2115 = vmatpush1.bf16.msra.mxu1 %v2114_v19  ;;  %v957_v18 = vld [vmem:[#allocation11 + $0x68] sm:$0xff]  ;;  %v955_v19 = vld [vmem:[#allocation11 + $0x58] sm:$0xff]  ;;  %v1022_v5 = vld [vmem:[#allocation11 + $0x270] sm:$0xff] }
 0x1cd   :  { %1989 = vmatprep.subr.bf16.mxu0 %v1988_v22  ;;  %2117 = vmatprep.subr.bf16.mxu1 %v2116_v24  ;;  %v2262_v22 = vpack.c.bf16 %v950_v16, %v946_v15  ;;  %v952_v24 = vld [vmem:[#allocation11 + $0x40] sm:$0xff]  ;;  %v2136_v23 = vpack.c.bf16 %v957_v18, %v953_v17  ;;  %v2264_v27 = vpack.c.bf16 %v959_v20, %v955_v19  ;;  %v986_v16 = vld [vmem:[#allocation11 + $0x150] sm:$0xff]  ;;  %v993_v18 = vld [vmem:[#allocation11 + $0x188] sm:$0xff] }
 0x1ce   :  { %v2138_v34 = vpack.c.bf16 %v956_v25, %v952_v24  ;;  %v990_v17 = vld [vmem:[#allocation11 + $0x170] sm:$0xff]  ;;  %v997_v19 = vld [vmem:[#allocation11 + $0x1a8] sm:$0xff]  ;;  %v995_v20 = vld [vmem:[#allocation11 + $0x198] sm:$0xff] }
 0x1cf   :  { %v2282_v24 = vpack.c.bf16 %v990_v17, %v986_v16  ;;  %v992_v25 = vld [vmem:[#allocation11 + $0x180] sm:$0xff]  ;;  %v1026_v16 = vld [vmem:[#allocation11 + $0x290] sm:$0xff] }
 0x1d0   :  { %1991 = vmatpush1.bf16.msra.mxu0 %v1990_v31  ;;  %2119 = vmatpush1.bf16.msra.mxu1 %v2118_v32  ;;  %v965_v31 = vld [vmem:[#allocation11 + $0xa8] sm:$0xff]  ;;  %v963_v32 = vld [vmem:[#allocation11 + $0x98] sm:$0xff]  ;;  %v1030_v17 = vld [vmem:[#allocation11 + $0x2b0] sm:$0xff] }
 0x1d1   :  { %1993 = vmatprep.subr.bf16.mxu0 %v1992_v35  ;;  %2121 = vmatprep.subr.bf16.mxu1 %v2120_v36  ;;  %v2266_v35 = vpack.c.bf16 %v958_v29, %v954_v28  ;;  %v960_v36 = vld [vmem:[#allocation11 + $0x80] sm:$0xff]  ;;  %v2140_v38 = vpack.c.bf16 %v965_v31, %v961_v30  ;;  %v2268_v39 = vpack.c.bf16 %v967_v33, %v963_v32  ;;  %v994_v28 = vld [vmem:[#allocation11 + $0x190] sm:$0xff]  ;;  %v1001_v30 = vld [vmem:[#allocation11 + $0x1c8] sm:$0xff] }
 0x1d2   :  { %v2142_v50 = vpack.c.bf16 %v964_v37, %v960_v36  ;;  %v998_v29 = vld [vmem:[#allocation11 + $0x1b0] sm:$0xff]  ;;  %v1005_v31 = vld [vmem:[#allocation11 + $0x1e8] sm:$0xff]  ;;  %v1003_v32 = vld [vmem:[#allocation11 + $0x1d8] sm:$0xff] }
 0x1d3   :  { %v1007_v33 = vld [vmem:[#allocation11 + $0x1f8] sm:$0xff]  ;;  %v1000_v36 = vld [vmem:[#allocation11 + $0x1c0] sm:$0xff] }
 0x1d4   :  { %1995 = vmatpush1.bf16.msra.mxu0 %v1994_v47  ;;  %2123 = vmatpush1.bf16.msra.mxu1 %v2122_v48  ;;  %v973_v47 = vld [vmem:[#allocation11 + $0xe8] sm:$0xff]  ;;  %v971_v48 = vld [vmem:[#allocation11 + $0xd8] sm:$0xff]  ;;  %v1004_v37 = vld [vmem:[#allocation11 + $0x1e0] sm:$0xff] }
 0x1d5   :  { %1997 = vmatprep.subr.bf16.mxu0 %v1996_v52  ;;  %2125 = vmatprep.subr.bf16.mxu1 %v2124_v53  ;;  %v2270_v52 = vpack.c.bf16 %v966_v45, %v962_v40  ;;  %v968_v53 = vld [vmem:[#allocation11 + $0xc0] sm:$0xff]  ;;  %v2144_v55 = vpack.c.bf16 %v973_v47, %v969_v46  ;;  %v2272_v56 = vpack.c.bf16 %v975_v49, %v971_v48  ;;  %v1002_v40 = vld [vmem:[#allocation11 + $0x1d0] sm:$0xff]  ;;  %v1009_v46 = vld [vmem:[#allocation11 + $0x208] sm:$0xff] }
 0x1d6   :  { %v2146_v63 = vpack.c.bf16 %v972_v54, %v968_v53  ;;  %v1006_v45 = vld [vmem:[#allocation11 + $0x1f0] sm:$0xff]  ;;  %v1013_v47 = vld [vmem:[#allocation11 + $0x228] sm:$0xff]  ;;  %v1011_v48 = vld [vmem:[#allocation11 + $0x218] sm:$0xff] }
 0x1d7   :  { %v1015_v49 = vld [vmem:[#allocation11 + $0x238] sm:$0xff]  ;;  %v1008_v53 = vld [vmem:[#allocation11 + $0x200] sm:$0xff] }
 0x1d8   :  { %1999 = vmatpush1.bf16.msra.mxu0 %v1998_v60  ;;  %2127 = vmatpush1.bf16.msra.mxu1 %v2126_v61  ;;  %v981_v60 = vld [vmem:[#allocation11 + $0x128] sm:$0xff]  ;;  %v979_v61 = vld [vmem:[#allocation11 + $0x118] sm:$0xff]  ;;  %v1012_v54 = vld [vmem:[#allocation11 + $0x220] sm:$0xff] }
 0x1d9   :  { %2001 = vmatprep.subr.bf16.mxu0 %v2000_v41  ;;  %2129 = vmatprep.subr.bf16.mxu1 %v2128_v1  ;;  %v976_v41 = vld [vmem:[#allocation11 + $0x100] sm:$0xff]  ;;  %v2148_v2 = vpack.c.bf16 %v981_v60, %v977_v59  ;;  %v2276_v3 = vpack.c.bf16 %v983_v62, %v979_v61  ;;  %v1017_v59 = vld [vmem:[#allocation11 + $0x248] sm:$0xff]  ;;  %v1019_v61 = vld [vmem:[#allocation11 + $0x258] sm:$0xff] }
 0x1da   :  { %v980_v1 = vld [vmem:[#allocation11 + $0x120] sm:$0xff]  ;;  %v1021_v60 = vld [vmem:[#allocation11 + $0x268] sm:$0xff]  ;;  %v1023_v62 = vld [vmem:[#allocation11 + $0x278] sm:$0xff] }
 0x1db   :  { %v2150_v11 = vpack.c.bf16 %v980_v1, %v976_v41  ;;  %v1016_v41 = vld [vmem:[#allocation11 + $0x240] sm:$0xff] }
 0x1dc   :  { %2003 = vmatpush1.bf16.msra.mxu0 %v2002_v9  ;;  %2131 = vmatpush1.bf16.msra.mxu1 %v2130_v10  ;;  %v987_v9 = vld [vmem:[#allocation11 + $0x158] sm:$0xff]  ;;  %v1020_v1 = vld [vmem:[#allocation11 + $0x260] sm:$0xff] }
 0x1dd   :  { %2133 = vmatprep.subr.bf16.mxu0 %v2132_v43  ;;  %2261 = vmatprep.subr.bf16.mxu1 %v2260_v14  ;;  %v991_v10 = vld [vmem:[#allocation11 + $0x178] sm:$0xff]  ;;  %v988_v43 = vld [vmem:[#allocation11 + $0x160] sm:$0xff]  ;;  %v2152_v14 = vpack.c.bf16 %v989_v8, %v985_v7  ;;  %v1025_v7 = vld [vmem:[#allocation11 + $0x288] sm:$0xff] }
 0x1de   :  { %v2280_v15 = vpack.c.bf16 %v991_v10, %v987_v9  ;;  %v1029_v8 = vld [vmem:[#allocation11 + $0x2a8] sm:$0xff]  ;;  %v1027_v9 = vld [vmem:[#allocation11 + $0x298] sm:$0xff] }
 0x1df   :  { %792 = vmatmul.mubr.f32.vlgmr.msra.gmra.mrb[2].mxu0 %v376_v26  ;;  %934 = vmatmul.mubr.f32.vlgmr.msra.gmra.mrb[2].mxu1 %v376_v26  ;;  %v996_v26 = vld [vmem:[#allocation11 + $0x1a0] sm:$0xff]  ;;  %v1031_v10 = vld [vmem:[#allocation11 + $0x2b8] sm:$0xff] }
 0x1e0   :  { %2135 = vmatpush1.bf16.msra.mxu0 %v2134_v21  ;;  %2263 = vmatpush1.bf16.msra.mxu1 %v2262_v22  ;;  %v999_v21 = vld [vmem:[#allocation11 + $0x1b8] sm:$0xff]  ;;  %v2154_v22 = vpack.c.bf16 %v988_v43, %v984_v13  ;;  %v1024_v13 = vld [vmem:[#allocation11 + $0x280] sm:$0xff] }
 0x1e1   :  { %2137 = vmatprep.subr.bf16.mxu0 %v2136_v23  ;;  %2265 = vmatprep.subr.bf16.mxu1 %v2264_v27  ;;  %v2156_v23 = vpack.c.bf16 %v997_v19, %v993_v18  ;;  %v2284_v27 = vpack.c.bf16 %v999_v21, %v995_v20  ;;  %v1028_v43 = vld [vmem:[#allocation11 + $0x2a0] sm:$0xff]  ;;  %v1033_v18 = vld [vmem:[#allocation11 + $0x2c8] sm:$0xff]  ;;  %v1035_v20 = vld [vmem:[#allocation11 + $0x2d8] sm:$0xff] }
 0x1e2   :  { %v1037_v19 = vld [vmem:[#allocation11 + $0x2e8] sm:$0xff]  ;;  %v1039_v21 = vld [vmem:[#allocation11 + $0x2f8] sm:$0xff] }
 0x1e4   :  { %2139 = vmatpush1.bf16.msra.mxu0 %v2138_v34  ;;  %2267 = vmatpush1.bf16.msra.mxu1 %v2266_v35  ;;  %v2158_v34 = vpack.c.bf16 %v996_v26, %v992_v25  ;;  %v2286_v35 = vpack.c.bf16 %v998_v29, %v994_v28  ;;  %v1032_v25 = vld [vmem:[#allocation11 + $0x2c0] sm:$0xff]  ;;  %v1034_v28 = vld [vmem:[#allocation11 + $0x2d0] sm:$0xff] }
 0x1e5   :  { %2141 = vmatprep.subr.bf16.mxu0 %v2140_v38  ;;  %2269 = vmatprep.subr.bf16.mxu1 %v2268_v39  ;;  %v2160_v38 = vpack.c.bf16 %v1005_v31, %v1001_v30  ;;  %v2288_v39 = vpack.c.bf16 %v1007_v33, %v1003_v32  ;;  %v1036_v26 = vld [vmem:[#allocation11 + $0x2e0] sm:$0xff]  ;;  %v1038_v29 = vld [vmem:[#allocation11 + $0x2f0] sm:$0xff]  ;;  %v1041_v30 = vld [vmem:[#allocation11 + $0x308] sm:$0xff] }
 0x1e6   :  { %v1045_v31 = vld [vmem:[#allocation11 + $0x328] sm:$0xff]  ;;  %v1043_v32 = vld [vmem:[#allocation11 + $0x318] sm:$0xff] }
 0x1e7   :  { %v1047_v33 = vld [vmem:[#allocation11 + $0x338] sm:$0xff] }
 0x1e8   :  { %2143 = vmatpush1.bf16.msra.mxu0 %v2142_v50  ;;  %2271 = vmatpush1.bf16.msra.mxu1 %v2270_v52  ;;  %v2162_v50 = vpack.c.bf16 %v1004_v37, %v1000_v36  ;;  %v2290_v52 = vpack.c.bf16 %v1006_v45, %v1002_v40  ;;  %v1040_v36 = vld [vmem:[#allocation11 + $0x300] sm:$0xff]  ;;  %v1042_v40 = vld [vmem:[#allocation11 + $0x310] sm:$0xff] }
 0x1e9   :  { %2145 = vmatprep.subr.bf16.mxu0 %v2144_v55  ;;  %2273 = vmatprep.subr.bf16.mxu1 %v2272_v56  ;;  %v2164_v55 = vpack.c.bf16 %v1013_v47, %v1009_v46  ;;  %v2292_v56 = vpack.c.bf16 %v1015_v49, %v1011_v48  ;;  %v1044_v37 = vld [vmem:[#allocation11 + $0x320] sm:$0xff]  ;;  %v1046_v45 = vld [vmem:[#allocation11 + $0x330] sm:$0xff]  ;;  %v1049_v46 = vld [vmem:[#allocation11 + $0x348] sm:$0xff] }
 0x1ea   :  { %v1053_v47 = vld [vmem:[#allocation11 + $0x368] sm:$0xff]  ;;  %v1051_v48 = vld [vmem:[#allocation11 + $0x358] sm:$0xff] }
 0x1eb   :  { %v1055_v49 = vld [vmem:[#allocation11 + $0x378] sm:$0xff] }
 0x1ec   :  { %2147 = vmatpush1.bf16.msra.mxu0 %v2146_v63  ;;  %2275 = vmatpush1.bf16.msra.mxu1 %v2274_v0  ;;  %v2166_v63 = vpack.c.bf16 %v1012_v54, %v1008_v53  ;;  %v2294_v0 = vpack.c.bf16 %v1014_v58, %v1010_v57  ;;  %v1048_v53 = vld [vmem:[#allocation11 + $0x340] sm:$0xff]  ;;  %v1050_v57 = vld [vmem:[#allocation11 + $0x350] sm:$0xff] }
 0x1ed   :  { %2149 = vmatprep.subr.bf16.mxu0 %v2148_v2  ;;  %2277 = vmatprep.subr.bf16.mxu1 %v2276_v3  ;;  %v2168_v2 = vpack.c.bf16 %v1021_v60, %v1017_v59  ;;  %v2296_v3 = vpack.c.bf16 %v1023_v62, %v1019_v61  ;;  %v1052_v54 = vld [vmem:[#allocation11 + $0x360] sm:$0xff]  ;;  %v1054_v58 = vld [vmem:[#allocation11 + $0x370] sm:$0xff]  ;;  %v1057_v59 = vld [vmem:[#allocation11 + $0x388] sm:$0xff] }
 0x1ee   :  { %v1061_v60 = vld [vmem:[#allocation11 + $0x3a8] sm:$0xff]  ;;  %v1059_v61 = vld [vmem:[#allocation11 + $0x398] sm:$0xff] }
 0x1ef   :  { %v1063_v62 = vld [vmem:[#allocation11 + $0x3b8] sm:$0xff] }
 0x1f0   :  { %2151 = vmatpush1.bf16.msra.mxu0 %v2150_v11  ;;  %2279 = vmatpush1.bf16.msra.mxu1 %v2278_v12  ;;  %v2170_v11 = vpack.c.bf16 %v1020_v1, %v1016_v41  ;;  %v2298_v12 = vpack.c.bf16 %v1022_v5, %v1018_v4  ;;  %v1056_v41 = vld [vmem:[#allocation11 + $0x380] sm:$0xff]  ;;  %v2188_v1 = vpack.c.bf16 %v1061_v60, %v1057_v59  ;;  %v1058_v4 = vld [vmem:[#allocation11 + $0x390] sm:$0xff] }
 0x1f1   :  { %2153 = vmatprep.subr.bf16.mxu0 %v2152_v14  ;;  %2281 = vmatprep.subr.bf16.mxu1 %v2280_v15  ;;  %v2172_v14 = vpack.c.bf16 %v1029_v8, %v1025_v7  ;;  %v2300_v15 = vpack.c.bf16 %v1031_v10, %v1027_v9  ;;  %v1062_v5 = vld [vmem:[#allocation11 + $0x3b0] sm:$0xff]  ;;  %v1065_v9 = vld [vmem:[#allocation11 + $0x3c8] sm:$0xff] }
 0x1f2   :  { %v2318_v8 = vpack.c.bf16 %v1062_v5, %v1058_v4  ;;  %v1069_v10 = vld [vmem:[#allocation11 + $0x3e8] sm:$0xff] }
 0x1f4   :  { %2155 = vmatpush1.bf16.msra.mxu0 %v2154_v22  ;;  %2283 = vmatpush1.bf16.msra.mxu1 %v2282_v24  ;;  %v2174_v22 = vpack.c.bf16 %v1028_v43, %v1024_v13  ;;  %v2302_v24 = vpack.c.bf16 %v1030_v17, %v1026_v16  ;;  %v1071_v13 = vld [vmem:[#allocation11 + $0x3f8] sm:$0xff]  ;;  %v1064_v43 = vld [vmem:[#allocation11 + $0x3c0] sm:$0xff]  ;;  %v1066_v17 = vld [vmem:[#allocation11 + $0x3d0] sm:$0xff] }
 0x1f5   :  { %2157 = vmatprep.subr.bf16.mxu0 %v2156_v23  ;;  %2285 = vmatprep.subr.bf16.mxu1 %v2284_v27  ;;  %v2176_v23 = vpack.c.bf16 %v1037_v19, %v1033_v18  ;;  %v2304_v27 = vpack.c.bf16 %v1039_v21, %v1035_v20  ;;  %v1070_v18 = vld [vmem:[#allocation11 + $0x3f0] sm:$0xff]  ;;  %v1073_v20 = vld [vmem:[#allocation11 + $0x408] sm:$0xff] }
 0x1f6   :  { %v2322_v19 = vpack.c.bf16 %v1070_v18, %v1066_v17  ;;  %v1077_v21 = vld [vmem:[#allocation11 + $0x428] sm:$0xff]  ;;  %v1098_v18 = vld [vmem:[#allocation11 + $0x4d0] sm:$0xff] }
 0x1f8   :  { %2159 = vmatpush1.bf16.msra.mxu0 %v2158_v34  ;;  %2287 = vmatpush1.bf16.msra.mxu1 %v2286_v35  ;;  %v2178_v34 = vpack.c.bf16 %v1036_v26, %v1032_v25  ;;  %v2306_v35 = vpack.c.bf16 %v1038_v29, %v1034_v28  ;;  %v1079_v25 = vld [vmem:[#allocation11 + $0x438] sm:$0xff] }
 0x1f9   :  { %2161 = vmatprep.subr.bf16.mxu0 %v2160_v38  ;;  %2289 = vmatprep.subr.bf16.mxu1 %v2288_v39  ;;  %v2180_v38 = vpack.c.bf16 %v1045_v31, %v1041_v30  ;;  %v2308_v39 = vpack.c.bf16 %v1047_v33, %v1043_v32  ;;  %v1072_v32 = vld [vmem:[#allocation11 + $0x400] sm:$0xff] }
 0x1fc   :  { %2163 = vmatpush1.bf16.msra.mxu0 %v2162_v50  ;;  %2291 = vmatpush1.bf16.msra.mxu1 %v2290_v52  ;;  %v2182_v50 = vpack.c.bf16 %v1044_v37, %v1040_v36  ;;  %v2310_v52 = vpack.c.bf16 %v1046_v45, %v1042_v40  ;;  %v1076_v36 = vld [vmem:[#allocation11 + $0x420] sm:$0xff]  ;;  %v1074_v37 = vld [vmem:[#allocation11 + $0x410] sm:$0xff]  ;;  %v1081_v40 = vld [vmem:[#allocation11 + $0x448] sm:$0xff] }
 0x1fd   :  { %2165 = vmatprep.subr.bf16.mxu0 %v2164_v55  ;;  %2293 = vmatprep.subr.bf16.mxu1 %v2292_v56  ;;  %v2184_v55 = vpack.c.bf16 %v1053_v47, %v1049_v46  ;;  %v2312_v56 = vpack.c.bf16 %v1055_v49, %v1051_v48  ;;  %v1085_v46 = vld [vmem:[#allocation11 + $0x468] sm:$0xff]  ;;  %v1083_v47 = vld [vmem:[#allocation11 + $0x458] sm:$0xff] }
 0x1fe   :  { %v1087_v48 = vld [vmem:[#allocation11 + $0x478] sm:$0xff]  ;;  %v2200_v59 = vpack.c.bf16 %v1085_v46, %v1081_v40  ;;  %v1112_v40 = vld [vmem:[#allocation11 + $0x540] sm:$0xff] }
 0x1ff   :  { %v2328_v60 = vpack.c.bf16 %v1087_v48, %v1083_v47  ;;  %v1114_v48 = vld [vmem:[#allocation11 + $0x550] sm:$0xff] }
 0x200   :  { %2167 = vmatpush1.bf16.msra.mxu0 %v2166_v63  ;;  %2295 = vmatpush1.bf16.msra.mxu1 %v2294_v0  ;;  %v2186_v63 = vpack.c.bf16 %v1052_v54, %v1048_v53  ;;  %v2314_v0 = vpack.c.bf16 %v1054_v58, %v1050_v57  ;;  %v1080_v53 = vld [vmem:[#allocation11 + $0x440] sm:$0xff]  ;;  %v1086_v57 = vld [vmem:[#allocation11 + $0x470] sm:$0xff]  ;;  %v1089_v58 = vld [vmem:[#allocation11 + $0x488] sm:$0xff] }
 0x201   :  { %2169 = vmatprep.subr.bf16.mxu0 %v2168_v2  ;;  %2297 = vmatprep.subr.bf16.mxu1 %v2296_v3  ;;  %v2316_v2 = vpack.c.bf16 %v1063_v62, %v1059_v61  ;;  %v1060_v3 = vld [vmem:[#allocation11 + $0x3a0] sm:$0xff]  ;;  %v1093_v61 = vld [vmem:[#allocation11 + $0x4a8] sm:$0xff]  ;;  %v1091_v62 = vld [vmem:[#allocation11 + $0x498] sm:$0xff] }
 0x202   :  { %v2190_v7 = vpack.c.bf16 %v1060_v3, %v1056_v41  ;;  %v1084_v54 = vld [vmem:[#allocation11 + $0x460] sm:$0xff]  ;;  %v2204_v4 = vpack.c.bf16 %v1093_v61, %v1089_v58  ;;  %v1122_v61 = vld [vmem:[#allocation11 + $0x590] sm:$0xff] }
 0x203   :  { %v2202_v41 = vpack.c.bf16 %v1084_v54, %v1080_v53  ;;  %v1092_v3 = vld [vmem:[#allocation11 + $0x4a0] sm:$0xff]  ;;  %v1123_v53 = vld [vmem:[#allocation11 + $0x598] sm:$0xff] }
 0x204   :  { %2171 = vmatpush1.bf16.msra.mxu0 %v2170_v11  ;;  %2299 = vmatpush1.bf16.msra.mxu1 %v2298_v12  ;;  %v1067_v11 = vld [vmem:[#allocation11 + $0x3d8] sm:$0xff]  ;;  %v2192_v12 = vpack.c.bf16 %v1069_v10, %v1065_v9  ;;  %v1097_v9 = vld [vmem:[#allocation11 + $0x4c8] sm:$0xff]  ;;  %v1124_v58 = vld [vmem:[#allocation11 + $0x5a0] sm:$0xff] }
 0x205   :  { %2173 = vmatprep.subr.bf16.mxu0 %v2172_v14  ;;  %2301 = vmatprep.subr.bf16.mxu1 %v2300_v15  ;;  %v1068_v14 = vld [vmem:[#allocation11 + $0x3e0] sm:$0xff]  ;;  %v2320_v15 = vpack.c.bf16 %v1071_v13, %v1067_v11  ;;  %v1101_v10 = vld [vmem:[#allocation11 + $0x4e8] sm:$0xff]  ;;  %v1099_v11 = vld [vmem:[#allocation11 + $0x4d8] sm:$0xff] }
 0x206   :  { %v2194_v16 = vpack.c.bf16 %v1068_v14, %v1064_v43  ;;  %v1096_v14 = vld [vmem:[#allocation11 + $0x4c0] sm:$0xff]  ;;  %v1127_v54 = vld [vmem:[#allocation11 + $0x5b8] sm:$0xff] }
 0x208   :  { %2175 = vmatpush1.bf16.msra.mxu0 %v2174_v22  ;;  %2303 = vmatpush1.bf16.msra.mxu1 %v2302_v24  ;;  %v1075_v22 = vld [vmem:[#allocation11 + $0x418] sm:$0xff]  ;;  %v2196_v24 = vpack.c.bf16 %v1077_v21, %v1073_v20  ;;  %v1105_v20 = vld [vmem:[#allocation11 + $0x508] sm:$0xff] }
 0x209   :  { %2177 = vmatprep.subr.bf16.mxu0 %v2176_v23  ;;  %2305 = vmatprep.subr.bf16.mxu1 %v2304_v27  ;;  %v2324_v26 = vpack.c.bf16 %v1079_v25, %v1075_v22  ;;  %v2928_v23 = vld [vmem:[#allocation10] sm:$0xf]  ;;  %v1109_v21 = vld [vmem:[#allocation11 + $0x528] sm:$0xff] }
 0x20a   :  { %v639_v27 = vrot.slane %v2928_v23, %v2904_v42  ;;  %v643_v28 = vrot.slane %v2928_v23, %v2909_v44  ;;  %v651_v29 = vrot.slane %v2928_v23, %v2916_v6  ;;  %v1107_v22 = vld [vmem:[#allocation11 + $0x518] sm:$0xff] }
 0x20c   :  { %2179 = vmatpush1.bf16.msra.mxu0 %v2178_v34  ;;  %2307 = vmatpush1.bf16.msra.mxu1 %v2306_v35 }
 0x20d   :  { %2181 = vmatprep.subr.bf16.mxu0 %v2180_v38  ;;  %2309 = vmatprep.subr.bf16.mxu1 %v2308_v39  ;;  %v1078_v38 = vld [vmem:[#allocation11 + $0x430] sm:$0xff] }
 0x210   :  { %2183 = vmatpush1.bf16.msra.mxu0 %v2182_v50  ;;  %2311 = vmatpush1.bf16.msra.mxu1 %v2310_v52  ;;  %v2198_v50 = vpack.c.bf16 %v1076_v36, %v1072_v32  ;;  %v2326_v52 = vpack.c.bf16 %v1078_v38, %v1074_v37  ;;  %v1106_v32 = vld [vmem:[#allocation11 + $0x510] sm:$0xff]  ;;  %v1115_v36 = vld [vmem:[#allocation11 + $0x558] sm:$0xff] }
 0x211   :  { %2185 = vmatprep.subr.bf16.mxu0 %v2184_v55  ;;  %2313 = vmatprep.subr.bf16.mxu1 %v2312_v56  ;;  %v1082_v56 = vld [vmem:[#allocation11 + $0x450] sm:$0xff]  ;;  %v1119_v37 = vld [vmem:[#allocation11 + $0x578] sm:$0xff] }
 0x212   :  { %v2344_v47 = vpack.c.bf16 %v1119_v37, %v1115_v36  ;;  %v1153_v36 = vld [vmem:[#allocation11 + $0x688] sm:$0xff] }
 0x213   :  { %v1157_v37 = vld [vmem:[#allocation11 + $0x6a8] sm:$0xff] }
 0x214   :  { %2187 = vmatpush1.bf16.msra.mxu0 %v2186_v63  ;;  %2315 = vmatpush1.bf16.msra.mxu1 %v2314_v0  ;;  %v1095_v63 = vld [vmem:[#allocation11 + $0x4b8] sm:$0xff] }
 0x215   :  { %2189 = vmatprep.subr.bf16.mxu0 %v2188_v1  ;;  %2317 = vmatprep.subr.bf16.mxu1 %v2316_v2  ;;  %v2330_v1 = vpack.c.bf16 %v1086_v57, %v1082_v56  ;;  %v1088_v2 = vld [vmem:[#allocation11 + $0x480] sm:$0xff]  ;;  %v2332_v5 = vpack.c.bf16 %v1095_v63, %v1091_v62  ;;  %v1126_v62 = vld [vmem:[#allocation11 + $0x5b0] sm:$0xff]  ;;  %v1129_v63 = vld [vmem:[#allocation11 + $0x5c8] sm:$0xff] }
 0x216   :  { %v2206_v13 = vpack.c.bf16 %v1092_v3, %v1088_v2  ;;  %v1120_v57 = vld [vmem:[#allocation11 + $0x580] sm:$0xff]  ;;  %v2350_v3 = vpack.c.bf16 %v1126_v62, %v1122_v61 }
 0x217   :  { %v2222_v2 = vpack.c.bf16 %v1124_v58, %v1120_v57 }
 0x218   :  { %2191 = vmatpush1.bf16.msra.mxu0 %v2190_v7  ;;  %2319 = vmatpush1.bf16.msra.mxu1 %v2318_v8  ;;  %v1090_v7 = vld [vmem:[#allocation11 + $0x490] sm:$0xff] }
 0x219   :  { %2193 = vmatprep.subr.bf16.mxu0 %v2192_v12  ;;  %2321 = vmatprep.subr.bf16.mxu1 %v2320_v15  ;;  %v1094_v8 = vld [vmem:[#allocation11 + $0x4b0] sm:$0xff]  ;;  %v1103_v12 = vld [vmem:[#allocation11 + $0x4f8] sm:$0xff]  ;;  %v1100_v15 = vld [vmem:[#allocation11 + $0x4e0] sm:$0xff] }
 0x21a   :  { %v2334_v43 = vpack.c.bf16 %v1094_v8, %v1090_v7  ;;  %v2336_v17 = vpack.c.bf16 %v1103_v12, %v1099_v11  ;;  %v2210_v25 = vpack.c.bf16 %v1100_v15, %v1096_v14  ;;  %v1137_v11 = vld [vmem:[#allocation11 + $0x608] sm:$0xff] }
 0x21b   :  { %v1141_v12 = vld [vmem:[#allocation11 + $0x628] sm:$0xff] }
 0x21c   :  { %2195 = vmatpush1.bf16.msra.mxu0 %v2194_v16  ;;  %2323 = vmatpush1.bf16.msra.mxu1 %v2322_v19  ;;  %v2208_v16 = vpack.c.bf16 %v1101_v10, %v1097_v9  ;;  %v1102_v19 = vld [vmem:[#allocation11 + $0x4f0] sm:$0xff] }
 0x21d   :  { %2197 = vmatprep.subr.bf16.mxu0 %v2196_v24  ;;  %2325 = vmatprep.subr.bf16.mxu1 %v2324_v26  ;;  %v1111_v24 = vld [vmem:[#allocation11 + $0x538] sm:$0xff]  ;;  %v2338_v26 = vpack.c.bf16 %v1102_v19, %v1098_v18  ;;  %v1130_v9 = vld [vmem:[#allocation11 + $0x5d0] sm:$0xff]  ;;  %v2228_v18 = vpack.c.bf16 %v1141_v12, %v1137_v11 }
 0x21e   :  { %v1134_v10 = vld [vmem:[#allocation11 + $0x5f0] sm:$0xff] }
 0x21f   :  { %v2354_v15 = vpack.c.bf16 %v1134_v10, %v1130_v9  ;;  %v1170_v11 = vld [vmem:[#allocation11 + $0x710] sm:$0xff] }
 0x220   :  { %v1174_v12 = vld [vmem:[#allocation11 + $0x730] sm:$0xff] }
 0x2b2   :  { %v793_v30 = vpop.f32.mrb[2].mxu0  ;;  %v2936_v31 = vpop.f32.mrb[2].mxu1 }
 0x2b3   :  { %v2452_v33 = vadd.f32 %v793_v30, %v639_v27  ;;  %v795_v34 = vpop.f32.mrb[3].mxu0  ;;  %v937_v35 = vpop.f32.mrb[3].mxu1  ;;  %v1104_v27 = vld [vmem:[#allocation11 + $0x500] sm:$0xff]  ;;  %v2340_v30 = vpack.c.bf16 %v1111_v24, %v1107_v22  ;;  %v1145_v22 = vld [vmem:[#allocation11 + $0x648] sm:$0xff] }
 0x2b4   :  { %v2453_v39 = vadd.f32 %v795_v34, %v643_v28  ;;  %v2455_v45 = vadd.f32 %v937_v35, %v651_v29  ;;  %v1108_v28 = vld [vmem:[#allocation11 + $0x520] sm:$0xff]  ;;  %v2212_v29 = vpack.c.bf16 %v1109_v21, %v1105_v20  ;;  %v1113_v34 = vld [vmem:[#allocation11 + $0x548] sm:$0xff]  ;;  %v1138_v20 = vld [vmem:[#allocation11 + $0x610] sm:$0xff] }
 0x2b5   :  { %v940_v55 = vmax.f32 %v2452_v33, 0.0  ;;  %v1110_v33 = vld [vmem:[#allocation11 + $0x530] sm:$0xff]  ;;  %v1117_v35 = vld [vmem:[#allocation11 + $0x568] sm:$0xff]  ;;  %v2214_v38 = vpack.c.bf16 %v1108_v28, %v1104_v27 }
 0x2b6   :  { %v941_v49 = vmax.f32 %v2453_v39, 0.0  ;;  %v943_v0 = vmax.f32 %v2455_v45, 0.0  ;;  %v2342_v39 = vpack.c.bf16 %v1110_v33, %v1106_v32  ;;  %v1116_v45 = vld [vmem:[#allocation11 + $0x560] sm:$0xff]  ;;  %v2216_v46 = vpack.c.bf16 %v1117_v35, %v1113_v34  ;;  %v1142_v21 = vld [vmem:[#allocation11 + $0x630] sm:$0xff]  ;;  %v1149_v24 = vld [vmem:[#allocation11 + $0x668] sm:$0xff] }
 0x2b7   :  { %v2358_v28 = vpack.c.bf16 %v1142_v21, %v1138_v20  ;;  %v2232_v32 = vpack.c.bf16 %v1149_v24, %v1145_v22  ;;  %v1146_v34 = vld [vmem:[#allocation11 + $0x650] sm:$0xff] }
 0x2b8   :  { %1286 = vmatprep.mubr.f32.mxu0 %v941_v49  ;;  %1428 = vmatprep.mubr.f32.mxu1 %v941_v49  ;;  %v1118_v49 = vld [vmem:[#allocation11 + $0x570] sm:$0xff] }
 0x2b9   :  { %1287 = vmatmul.mubr.f32.vlgmr.msra.gmra.mrb[4].mxu0 %v940_v55  ;;  %1429 = vmatmul.mubr.f32.vlgmr.msra.gmra.mrb[4].mxu1 %v940_v55  ;;  %v2218_v55 = vpack.c.bf16 %v1116_v45, %v1112_v40  ;;  %v2346_v56 = vpack.c.bf16 %v1118_v49, %v1114_v48  ;;  %v1150_v35 = vld [vmem:[#allocation11 + $0x670] sm:$0xff]  ;;  %v2236_v48 = vpack.c.bf16 %v1157_v37, %v1153_v36 }
 0x2ba   :  { %2199 = vmatpush1.bf16.msra.mxu0 %v2198_v50  ;;  %2327 = vmatpush1.bf16.msra.mxu1 %v2326_v52  ;;  %v1121_v50 = vld [vmem:[#allocation11 + $0x588] sm:$0xff]  ;;  %v2362_v45 = vpack.c.bf16 %v1150_v35, %v1146_v34  ;;  %v1178_v22 = vld [vmem:[#allocation11 + $0x750] sm:$0xff] }
 0x2bb   :  { %1357 = vmatprep.mubr.f32.mxu0 %v943_v0  ;;  %1499 = vmatprep.mubr.f32.mxu1 %v943_v0  ;;  %v1125_v52 = vld [vmem:[#allocation11 + $0x5a8] sm:$0xff]  ;;  %v1182_v24 = vld [vmem:[#allocation11 + $0x770] sm:$0xff] }
 0x2bc   :  { %2201 = vmatprep.subr.bf16.mxu0 %v2200_v59  ;;  %2329 = vmatprep.subr.bf16.mxu1 %v2328_v60  ;;  %v2220_v59 = vpack.c.bf16 %v1125_v52, %v1121_v50  ;;  %v2348_v60 = vpack.c.bf16 %v1127_v54, %v1123_v53  ;;  %v1133_v0 = vld [vmem:[#allocation11 + $0x5e8] sm:$0xff]  ;;  %v1154_v50 = vld [vmem:[#allocation11 + $0x690] sm:$0xff] }
 0x2bd   :  { %v2224_v7 = vpack.c.bf16 %v1133_v0, %v1129_v63  ;;  %v1158_v52 = vld [vmem:[#allocation11 + $0x6b0] sm:$0xff]  ;;  %v1161_v53 = vld [vmem:[#allocation11 + $0x6c8] sm:$0xff] }
 0x2be   :  { %2203 = vmatpush1.bf16.msra.mxu0 %v2202_v41  ;;  %2331 = vmatpush1.bf16.msra.mxu1 %v2330_v1  ;;  %v1131_v41 = vld [vmem:[#allocation11 + $0x5d8] sm:$0xff]  ;;  %v1165_v54 = vld [vmem:[#allocation11 + $0x6e8] sm:$0xff]  ;;  %v2366_v58 = vpack.c.bf16 %v1158_v52, %v1154_v50  ;;  %v1162_v63 = vld [vmem:[#allocation11 + $0x6d0] sm:$0xff]  ;;  %v647_v50 = vrot.slane %v2928_v23, %v2923_v51 }
 0x2bf   :  { %2205 = vmatprep.subr.bf16.mxu0 %v2204_v4  ;;  %2333 = vmatprep.subr.bf16.mxu1 %v2332_v5  ;;  %v1135_v1 = vld [vmem:[#allocation11 + $0x5f8] sm:$0xff]  ;;  %v1128_v4 = vld [vmem:[#allocation11 + $0x5c0] sm:$0xff]  ;;  %v2240_v61 = vpack.c.bf16 %v1165_v54, %v1161_v53  ;;  %v1166_v0 = vld [vmem:[#allocation11 + $0x6f0] sm:$0xff] }
 0x2c0   :  { %v1132_v5 = vld [vmem:[#allocation11 + $0x5e0] sm:$0xff]  ;;  %v2352_v8 = vpack.c.bf16 %v1135_v1, %v1131_v41  ;;  %v1169_v41 = vld [vmem:[#allocation11 + $0x708] sm:$0xff]  ;;  %v1186_v36 = vld [vmem:[#allocation11 + $0x790] sm:$0xff] }
 0x2c1   :  { %v2226_v14 = vpack.c.bf16 %v1132_v5, %v1128_v4  ;;  %v1173_v1 = vld [vmem:[#allocation11 + $0x728] sm:$0xff]  ;;  %v2370_v5 = vpack.c.bf16 %v1166_v0, %v1162_v63  ;;  %v1190_v37 = vld [vmem:[#allocation11 + $0x7b0] sm:$0xff]  ;;  %v2454_v0 = vadd.f32 %v2936_v31, %v647_v50 }
 0x2c2   :  { %2207 = vmatpush1.bf16.msra.mxu0 %v2206_v13  ;;  %2335 = vmatpush1.bf16.msra.mxu1 %v2334_v43  ;;  %v1139_v13 = vld [vmem:[#allocation11 + $0x618] sm:$0xff]  ;;  %v2244_v9 = vpack.c.bf16 %v1173_v1, %v1169_v41  ;;  %v1194_v54 = vld [vmem:[#allocation11 + $0x7d0] sm:$0xff]  ;;  %v1542_v1 = vld [vmem:[#allocation14 + $0x100] sm:$0xff] }
 0x2c3   :  { %2209 = vmatprep.subr.bf16.mxu0 %v2208_v16  ;;  %2337 = vmatprep.subr.bf16.mxu1 %v2336_v17  ;;  %v1143_v43 = vld [vmem:[#allocation11 + $0x638] sm:$0xff]  ;;  %v1136_v16 = vld [vmem:[#allocation11 + $0x600] sm:$0xff]  ;;  %v1511_v63 = vld [vmem:[#allocation14 + $0x8] sm:$0xff] }
 0x2c4   :  { %v1140_v17 = vld [vmem:[#allocation11 + $0x620] sm:$0xff]  ;;  %v2356_v19 = vpack.c.bf16 %v1143_v43, %v1139_v13  ;;  %v1177_v13 = vld [vmem:[#allocation11 + $0x748] sm:$0xff] }
 0x2c5   :  { %v2230_v27 = vpack.c.bf16 %v1140_v17, %v1136_v16  ;;  %v1181_v43 = vld [vmem:[#allocation11 + $0x768] sm:$0xff]  ;;  %v2374_v17 = vpack.c.bf16 %v1174_v12, %v1170_v11  ;;  %v1513_v11 = vld [vmem:[#allocation14 + $0x18] sm:$0xff]  ;;  %v942_v12 = vmax.f32 %v2454_v0, 0.0  ;;  %v1520_v0 = vld [vmem:[#allocation14 + $0x50] sm:$0xff] }
 0x2c6   :  { %2211 = vmatpush1.bf16.msra.mxu0 %v2210_v25  ;;  %2339 = vmatpush1.bf16.msra.mxu1 %v2338_v26  ;;  %v1147_v25 = vld [vmem:[#allocation11 + $0x658] sm:$0xff]  ;;  %v2248_v20 = vpack.c.bf16 %v1181_v43, %v1177_v13 }
 0x2c7   :  { %2213 = vmatprep.subr.bf16.mxu0 %v2212_v29  ;;  %2341 = vmatprep.subr.bf16.mxu1 %v2340_v30  ;;  %v1151_v26 = vld [vmem:[#allocation11 + $0x678] sm:$0xff]  ;;  %v1144_v29 = vld [vmem:[#allocation11 + $0x640] sm:$0xff] }
 0x2c8   :  { %v1148_v30 = vld [vmem:[#allocation11 + $0x660] sm:$0xff]  ;;  %v2360_v33 = vpack.c.bf16 %v1151_v26, %v1147_v25  ;;  %v1185_v25 = vld [vmem:[#allocation11 + $0x788] sm:$0xff]  ;;  %v1544_v43 = vld [vmem:[#allocation14 + $0x110] sm:$0xff] }
 0x2c9   :  { %v2234_v40 = vpack.c.bf16 %v1148_v30, %v1144_v29  ;;  %v1189_v26 = vld [vmem:[#allocation11 + $0x7a8] sm:$0xff]  ;;  %v2378_v30 = vpack.c.bf16 %v1182_v24, %v1178_v22 }
 0x2ca   :  { %2215 = vmatpush1.bf16.msra.mxu0 %v2214_v38  ;;  %2343 = vmatpush1.bf16.msra.mxu1 %v2342_v39  ;;  %v1155_v38 = vld [vmem:[#allocation11 + $0x698] sm:$0xff]  ;;  %v2252_v34 = vpack.c.bf16 %v1189_v26, %v1185_v25  ;;  %v1515_v22 = vld [vmem:[#allocation14 + $0x28] sm:$0xff]  ;;  %v1546_v26 = vld [vmem:[#allocation14 + $0x120] sm:$0xff] }
 0x2cb   :  { %2217 = vmatprep.subr.bf16.mxu0 %v2216_v46  ;;  %2345 = vmatprep.subr.bf16.mxu1 %v2344_v47  ;;  %v1159_v39 = vld [vmem:[#allocation11 + $0x6b8] sm:$0xff]  ;;  %v1152_v46 = vld [vmem:[#allocation11 + $0x680] sm:$0xff] }
 0x2cc   :  { %v1156_v47 = vld [vmem:[#allocation11 + $0x6a0] sm:$0xff]  ;;  %v2364_v49 = vpack.c.bf16 %v1159_v39, %v1155_v38  ;;  %v1193_v38 = vld [vmem:[#allocation11 + $0x7c8] sm:$0xff] }
 0x2cd   :  { %v2238_v57 = vpack.c.bf16 %v1156_v47, %v1152_v46  ;;  %v1197_v39 = vld [vmem:[#allocation11 + $0x7e8] sm:$0xff]  ;;  %v2382_v47 = vpack.c.bf16 %v1190_v37, %v1186_v36  ;;  %v1517_v36 = vld [vmem:[#allocation14 + $0x38] sm:$0xff] }
 0x2ce   :  { %2219 = vmatpush1.bf16.msra.mxu0 %v2218_v55  ;;  %2347 = vmatpush1.bf16.msra.mxu1 %v2346_v56  ;;  %v1163_v55 = vld [vmem:[#allocation11 + $0x6d8] sm:$0xff]  ;;  %v2256_v52 = vpack.c.bf16 %v1197_v39, %v1193_v38 }
 0x2cf   :  { %2221 = vmatprep.subr.bf16.mxu0 %v2220_v59  ;;  %2349 = vmatprep.subr.bf16.mxu1 %v2348_v60  ;;  %v1167_v56 = vld [vmem:[#allocation11 + $0x6f8] sm:$0xff]  ;;  %v1160_v59 = vld [vmem:[#allocation11 + $0x6c0] sm:$0xff] }
 0x2d0   :  { %v1164_v60 = vld [vmem:[#allocation11 + $0x6e0] sm:$0xff]  ;;  %v2368_v62 = vpack.c.bf16 %v1167_v56, %v1163_v55  ;;  %v1198_v55 = vld [vmem:[#allocation11 + $0x7f0] sm:$0xff] }
 0x2d1   :  { %v2242_v4 = vpack.c.bf16 %v1164_v60, %v1160_v59  ;;  %v1526_v56 = vld [vmem:[#allocation14 + $0x80] sm:$0xff]  ;;  %v1559_v59 = vld [vmem:[#allocation14 + $0x188] sm:$0xff]  ;;  %v1548_v39 = vld [vmem:[#allocation14 + $0x130] sm:$0xff] }
 0x2d2   :  { %2223 = vmatpush1.bf16.msra.mxu0 %v2222_v2  ;;  %2351 = vmatpush1.bf16.msra.mxu1 %v2350_v3  ;;  %v1171_v2 = vld [vmem:[#allocation11 + $0x718] sm:$0xff] }
 0x2d3   :  { %2225 = vmatprep.subr.bf16.mxu0 %v2224_v7  ;;  %2353 = vmatprep.subr.bf16.mxu1 %v2352_v8  ;;  %v1175_v3 = vld [vmem:[#allocation11 + $0x738] sm:$0xff]  ;;  %v1168_v7 = vld [vmem:[#allocation11 + $0x700] sm:$0xff] }
 0x2d4   :  { %v1172_v8 = vld [vmem:[#allocation11 + $0x720] sm:$0xff]  ;;  %v2372_v10 = vpack.c.bf16 %v1175_v3, %v1171_v2  ;;  %v1543_v2 = vld [vmem:[#allocation14 + $0x108] sm:$0xff]  ;;  %v1528_v3 = vld [vmem:[#allocation14 + $0x90] sm:$0xff] }
 0x2d5   :  { %v2246_v16 = vpack.c.bf16 %v1172_v8, %v1168_v7  ;;  %v1561_v7 = vld [vmem:[#allocation14 + $0x198] sm:$0xff] }
 0x2d6   :  { %2227 = vmatpush1.bf16.msra.mxu0 %v2226_v14  ;;  %2355 = vmatpush1.bf16.msra.mxu1 %v2354_v15  ;;  %v1179_v14 = vld [vmem:[#allocation11 + $0x758] sm:$0xff] }
 0x2d7   :  { %2229 = vmatprep.subr.bf16.mxu0 %v2228_v18  ;;  %2357 = vmatprep.subr.bf16.mxu1 %v2356_v19  ;;  %v1183_v15 = vld [vmem:[#allocation11 + $0x778] sm:$0xff]  ;;  %v1176_v18 = vld [vmem:[#allocation11 + $0x740] sm:$0xff] }
 0x2d8   :  { %v1180_v19 = vld [vmem:[#allocation11 + $0x760] sm:$0xff]  ;;  %v2376_v21 = vpack.c.bf16 %v1183_v15, %v1179_v14 }
 0x2d9   :  { %v2250_v29 = vpack.c.bf16 %v1180_v19, %v1176_v18  ;;  %v1545_v14 = vld [vmem:[#allocation14 + $0x118] sm:$0xff]  ;;  %v1530_v15 = vld [vmem:[#allocation14 + $0xa0] sm:$0xff]  ;;  %v1563_v18 = vld [vmem:[#allocation14 + $0x1a8] sm:$0xff] }
 0x2da   :  { %2231 = vmatpush1.bf16.msra.mxu0 %v2230_v27  ;;  %2359 = vmatpush1.bf16.msra.mxu1 %v2358_v28  ;;  %v1187_v27 = vld [vmem:[#allocation11 + $0x798] sm:$0xff] }
 0x2db   :  { %2233 = vmatprep.subr.bf16.mxu0 %v2232_v32  ;;  %2361 = vmatprep.subr.bf16.mxu1 %v2360_v33  ;;  %v1191_v28 = vld [vmem:[#allocation11 + $0x7b8] sm:$0xff]  ;;  %v1184_v32 = vld [vmem:[#allocation11 + $0x780] sm:$0xff] }
 0x2dc   :  { %v1188_v33 = vld [vmem:[#allocation11 + $0x7a0] sm:$0xff]  ;;  %v2380_v35 = vpack.c.bf16 %v1191_v28, %v1187_v27  ;;  %v1547_v27 = vld [vmem:[#allocation14 + $0x128] sm:$0xff]  ;;  %v1532_v28 = vld [vmem:[#allocation14 + $0xb0] sm:$0xff] }
 0x2dd   :  { %v2254_v46 = vpack.c.bf16 %v1188_v33, %v1184_v32  ;;  %v1565_v32 = vld [vmem:[#allocation14 + $0x1b8] sm:$0xff] }
 0x2de   :  { %2235 = vmatpush1.bf16.msra.mxu0 %v2234_v40  ;;  %2363 = vmatpush1.bf16.msra.mxu1 %v2362_v45  ;;  %v1195_v40 = vld [vmem:[#allocation11 + $0x7d8] sm:$0xff] }
 0x2df   :  { %2237 = vmatprep.subr.bf16.mxu0 %v2236_v48  ;;  %2365 = vmatprep.subr.bf16.mxu1 %v2364_v49  ;;  %v1199_v45 = vld [vmem:[#allocation11 + $0x7f8] sm:$0xff]  ;;  %v1192_v48 = vld [vmem:[#allocation11 + $0x7c0] sm:$0xff] }
 0x2e0   :  { %v1196_v49 = vld [vmem:[#allocation11 + $0x7e0] sm:$0xff]  ;;  %v2384_v53 = vpack.c.bf16 %v1199_v45, %v1195_v40 }
 0x2e1   :  { %v2258_v60 = vpack.c.bf16 %v1196_v49, %v1192_v48  ;;  %v1549_v40 = vld [vmem:[#allocation14 + $0x138] sm:$0xff]  ;;  %v1534_v45 = vld [vmem:[#allocation14 + $0xc0] sm:$0xff]  ;;  %v1567_v48 = vld [vmem:[#allocation14 + $0x1c8] sm:$0xff] }
 0x2e2   :  { %2239 = vmatpush1.bf16.msra.mxu0 %v2238_v57  ;;  %2367 = vmatpush1.bf16.msra.mxu1 %v2366_v58  ;;  %v1527_v57 = vld [vmem:[#allocation14 + $0x88] sm:$0xff]  ;;  %v1558_v58 = vld [vmem:[#allocation14 + $0x180] sm:$0xff]  ;;  %v2434_v50 = vpack.c.bf16 %v1549_v40, %v1548_v39 }
 0x2e3   :  { %2241 = vmatprep.subr.bf16.mxu0 %v2240_v61  ;;  %2369 = vmatprep.subr.bf16.mxu1 %v2368_v62  ;;  %v2386_v61 = vpack.c.bf16 %v1198_v55, %v1194_v54  ;;  %v1510_v62 = vld [vmem:[#allocation14] sm:$0xff]  ;;  %v2388_v23 = vpack.c.bf16 %v1527_v57, %v1526_v56  ;;  %v2420_v41 = vpack.c.bf16 %v1559_v59, %v1558_v58  ;;  %v1551_v57 = vld [vmem:[#allocation14 + $0x148] sm:$0xff]  ;;  %v1536_v58 = vld [vmem:[#allocation14 + $0xd0] sm:$0xff] }
 0x2e4   :  { %v2390_v8 = vpack.c.bf16 %v1511_v63, %v1510_v62  ;;  %v1550_v56 = vld [vmem:[#allocation14 + $0x140] sm:$0xff]  ;;  %v1537_v59 = vld [vmem:[#allocation14 + $0xd8] sm:$0xff] }
 0x2e5   :  { %v2438_v63 = vpack.c.bf16 %v1551_v57, %v1550_v56 }
 0x2e6   :  { %2243 = vmatpush1.bf16.msra.mxu0 %v2242_v4  ;;  %2371 = vmatpush1.bf16.msra.mxu1 %v2370_v5  ;;  %v1529_v4 = vld [vmem:[#allocation14 + $0x98] sm:$0xff]  ;;  %v1560_v5 = vld [vmem:[#allocation14 + $0x190] sm:$0xff] }
 0x2e7   :  { %2245 = vmatprep.subr.bf16.mxu0 %v2244_v9  ;;  %2373 = vmatprep.subr.bf16.mxu1 %v2372_v10  ;;  %v2422_v9 = vpack.c.bf16 %v1543_v2, %v1542_v1  ;;  %v1512_v10 = vld [vmem:[#allocation14 + $0x10] sm:$0xff]  ;;  %v2392_v31 = vpack.c.bf16 %v1529_v4, %v1528_v3  ;;  %v2424_v13 = vpack.c.bf16 %v1561_v7, %v1560_v5  ;;  %v1553_v3 = vld [vmem:[#allocation14 + $0x158] sm:$0xff]  ;;  %v1538_v4 = vld [vmem:[#allocation14 + $0xe0] sm:$0xff] }
 0x2e8   :  { %v2394_v19 = vpack.c.bf16 %v1513_v11, %v1512_v10  ;;  %v1552_v2 = vld [vmem:[#allocation14 + $0x150] sm:$0xff]  ;;  %v1539_v5 = vld [vmem:[#allocation14 + $0xe8] sm:$0xff]  ;;  %v1570_v7 = vld [vmem:[#allocation14 + $0x1e0] sm:$0xff] }
 0x2e9   :  { %v2442_v10 = vpack.c.bf16 %v1553_v3, %v1552_v2  ;;  %v2412_v11 = vpack.c.bf16 %v1539_v5, %v1538_v4 }
 0x2ea   :  { %2247 = vmatpush1.bf16.msra.mxu0 %v2246_v16  ;;  %2375 = vmatpush1.bf16.msra.mxu1 %v2374_v17  ;;  %v1531_v16 = vld [vmem:[#allocation14 + $0xa8] sm:$0xff]  ;;  %v1562_v17 = vld [vmem:[#allocation14 + $0x1a0] sm:$0xff] }
 0x2eb   :  { %2249 = vmatprep.subr.bf16.mxu0 %v2248_v20  ;;  %2377 = vmatprep.subr.bf16.mxu1 %v2376_v21  ;;  %v2426_v20 = vpack.c.bf16 %v1545_v14, %v1544_v43  ;;  %v1514_v21 = vld [vmem:[#allocation14 + $0x20] sm:$0xff]  ;;  %v2396_v24 = vpack.c.bf16 %v1531_v16, %v1530_v15  ;;  %v2428_v25 = vpack.c.bf16 %v1563_v18, %v1562_v17  ;;  %v1555_v15 = vld [vmem:[#allocation14 + $0x168] sm:$0xff]  ;;  %v1540_v17 = vld [vmem:[#allocation14 + $0xf0] sm:$0xff] }
 0x2ec   :  { %v2398_v33 = vpack.c.bf16 %v1515_v22, %v1514_v21  ;;  %v1554_v43 = vld [vmem:[#allocation14 + $0x160] sm:$0xff]  ;;  %v1541_v18 = vld [vmem:[#allocation14 + $0xf8] sm:$0xff]  ;;  %v1524_v22 = vld [vmem:[#allocation14 + $0x70] sm:$0xff] }
 0x2ed   :  { %v2446_v16 = vpack.c.bf16 %v1555_v15, %v1554_v43  ;;  %v1573_v21 = vld [vmem:[#allocation14 + $0x1f8] sm:$0xff] }
 0x2ee   :  { %2251 = vmatpush1.bf16.msra.mxu0 %v2250_v29  ;;  %2379 = vmatpush1.bf16.msra.mxu1 %v2378_v30  ;;  %v1533_v29 = vld [vmem:[#allocation14 + $0xb8] sm:$0xff]  ;;  %v1564_v30 = vld [vmem:[#allocation14 + $0x1b0] sm:$0xff] }
 0x2ef   :  { %2253 = vmatprep.subr.bf16.mxu0 %v2252_v34  ;;  %2381 = vmatprep.subr.bf16.mxu1 %v2380_v35  ;;  %v2430_v34 = vpack.c.bf16 %v1547_v27, %v1546_v26  ;;  %v1516_v35 = vld [vmem:[#allocation14 + $0x30] sm:$0xff]  ;;  %v2400_v37 = vpack.c.bf16 %v1533_v29, %v1532_v28  ;;  %v2432_v38 = vpack.c.bf16 %v1565_v32, %v1564_v30  ;;  %v1557_v28 = vld [vmem:[#allocation14 + $0x178] sm:$0xff] }
 0x2f0   :  { %v2402_v49 = vpack.c.bf16 %v1517_v36, %v1516_v35  ;;  %v1556_v27 = vld [vmem:[#allocation14 + $0x170] sm:$0xff]  ;;  %v1200_v30 = vld [vmem:[#allocation13] sm:$0xf] }
 0x2f1   :  { %v2450_v29 = vpack.c.bf16 %v1557_v28, %v1556_v27  ;;  %v1205_v32 = vrot.slane %v1200_v30, %v2904_v42  ;;  %v1217_v35 = vrot.slane %v1200_v30, %v2916_v6 }
 0x2f2   :  { %2255 = vmatpush1.bf16.msra.mxu0 %v2254_v46  ;;  %2383 = vmatpush1.bf16.msra.mxu1 %v2382_v47  ;;  %v1535_v46 = vld [vmem:[#allocation14 + $0xc8] sm:$0xff]  ;;  %v1566_v47 = vld [vmem:[#allocation14 + $0x1c0] sm:$0xff] }
 0x2f3   :  { %2257 = vmatprep.subr.bf16.mxu0 %v2256_v52  ;;  %2385 = vmatprep.subr.bf16.mxu1 %v2384_v53  ;;  %v1518_v52 = vld [vmem:[#allocation14 + $0x40] sm:$0xff]  ;;  %v1519_v53 = vld [vmem:[#allocation14 + $0x48] sm:$0xff]  ;;  %v2404_v54 = vpack.c.bf16 %v1535_v46, %v1534_v45  ;;  %v2436_v55 = vpack.c.bf16 %v1567_v48, %v1566_v47 }
 0x2f4   :  { %v2406_v62 = vpack.c.bf16 %v1519_v53, %v1518_v52 }
 0x2f6   :  { %2259 = vmatpush1.bf16.msra.mxu0 %v2258_v60  ;;  %2387 = vmatpush1.bf16.msra.mxu1 %v2386_v61  ;;  %v1568_v60 = vld [vmem:[#allocation14 + $0x1d0] sm:$0xff]  ;;  %v1569_v61 = vld [vmem:[#allocation14 + $0x1d8] sm:$0xff] }
 0x2f7   :  { %2389 = vmatprep.subr.bf16.mxu0 %v2388_v23  ;;  %2421 = vmatprep.subr.bf16.mxu1 %v2420_v41  ;;  %v1521_v23 = vld [vmem:[#allocation14 + $0x58] sm:$0xff]  ;;  %v2408_v41 = vpack.c.bf16 %v1537_v59, %v1536_v58  ;;  %v2440_v1 = vpack.c.bf16 %v1569_v61, %v1568_v60 }
 0x2f9   :  { %1358 = vmatmul.mubr.f32.vlgmr.msra.gmra.mrb[4].mxu0 %v942_v12  ;;  %1500 = vmatmul.mubr.f32.vlgmr.msra.gmra.mrb[4].mxu1 %v942_v12 }
 0x2fa   :  { %2391 = vmatpush3.bf16.msra.mxu0 %v2390_v8  ;;  %2423 = vmatpush3.bf16.msra.mxu1 %v2422_v9  ;;  %v1571_v8 = vld [vmem:[#allocation14 + $0x1e8] sm:$0xff]  ;;  %v2410_v9 = vpack.c.bf16 %v1521_v23, %v1520_v0 }
 0x2fb   :  { %2393 = vmatprep.subr.bf16.mxu0 %v2392_v31  ;;  %2425 = vmatprep.subr.bf16.mxu1 %v2424_v13  ;;  %v2444_v12 = vpack.c.bf16 %v1571_v8, %v1570_v7  ;;  %v1522_v31 = vld [vmem:[#allocation14 + $0x60] sm:$0xff]  ;;  %v1523_v13 = vld [vmem:[#allocation14 + $0x68] sm:$0xff] }
 0x2fc   :  { %v2414_v14 = vpack.c.bf16 %v1523_v13, %v1522_v31 }
 0x2fe   :  { %2395 = vmatpush3.bf16.msra.mxu0 %v2394_v19  ;;  %2427 = vmatpush3.bf16.msra.mxu1 %v2426_v20  ;;  %v1572_v19 = vld [vmem:[#allocation14 + $0x1f0] sm:$0xff]  ;;  %v2416_v20 = vpack.c.bf16 %v1541_v18, %v1540_v17 }
 0x2ff   :  { %2397 = vmatprep.subr.bf16.mxu0 %v2396_v24  ;;  %2429 = vmatprep.subr.bf16.mxu1 %v2428_v25  ;;  %v1525_v24 = vld [vmem:[#allocation14 + $0x78] sm:$0xff]  ;;  %v2448_v25 = vpack.c.bf16 %v1573_v21, %v1572_v19 }
 0x300   :  { %v2418_v26 = vpack.c.bf16 %v1525_v24, %v1524_v22 }
 0x302   :  { %2399 = vmatpush3.bf16.msra.mxu0 %v2398_v33  ;;  %2431 = vmatpush3.bf16.msra.mxu1 %v2430_v34  ;;  %v1213_v33 = vrot.slane %v1200_v30, %v2923_v51  ;;  %v1209_v34 = vrot.slane %v1200_v30, %v2909_v44  ;;  %v1741_v51 = vld [vmem:[#allocation16] ss:$0 sm:$0xff] }
 0x303   :  { %2401 = vmatprep.subr.bf16.mxu0 %v2400_v37  ;;  %2433 = vmatprep.subr.bf16.mxu1 %v2432_v38 }
 0x306   :  { %2403 = vmatpush3.bf16.msra.mxu0 %v2402_v49  ;;  %2435 = vmatpush3.bf16.msra.mxu1 %v2434_v50 }
 0x307   :  { %2405 = vmatprep.subr.bf16.mxu0 %v2404_v54  ;;  %2437 = vmatprep.subr.bf16.mxu1 %v2436_v55 }
 0x30a   :  { %2407 = vmatpush3.bf16.msra.mxu0 %v2406_v62  ;;  %2439 = vmatpush3.bf16.msra.mxu1 %v2438_v63 }
 0x30b   :  { %2409 = vmatprep.subr.bf16.mxu0 %v2408_v41  ;;  %2441 = vmatprep.subr.bf16.mxu1 %v2440_v1 }
 0x30e   :  { %2411 = vmatpush3.bf16.msra.mxu0 %v2410_v9  ;;  %2443 = vmatpush3.bf16.msra.mxu1 %v2442_v10 }
 0x30f   :  { %2413 = vmatprep.subr.bf16.mxu0 %v2412_v11  ;;  %2445 = vmatprep.subr.bf16.mxu1 %v2444_v12 }
 0x312   :  { %2415 = vmatpush3.bf16.msra.mxu0 %v2414_v14  ;;  %2447 = vmatpush3.bf16.msra.mxu1 %v2446_v16 }
 0x313   :  { %2417 = vmatprep.subr.bf16.mxu0 %v2416_v20  ;;  %2449 = vmatprep.subr.bf16.mxu1 %v2448_v25 }
 0x316   :  { %2419 = vmatpush3.bf16.msra.mxu0 %v2418_v26  ;;  %2451 = vmatpush3.bf16.msra.mxu1 %v2450_v29 }
 0x3cc   :  { %v1359_v36 = vpop.f32.mrb[4].mxu0  ;;  %v1501_v37 = vpop.f32.mrb[4].mxu1 }
 0x3cd   :  { %v2456_v38 = vadd.f32 %v1359_v36, %v1205_v32  ;;  %v2458_v39 = vadd.f32 %v1501_v37, %v1213_v33  ;;  %v1361_v40 = vpop.f32.mrb[5].mxu0  ;;  %v1503_v45 = vpop.f32.mrb[5].mxu1 }
 0x3ce   :  { %v2457_v46 = vadd.f32 %v1361_v40, %v1209_v34  ;;  %v2459_v47 = vadd.f32 %v1503_v45, %v1217_v35 }
 0x3cf   :  { %v1506_v50 = vmax.f32 %v2456_v38, 0.0  ;;  %v1508_v52 = vmax.f32 %v2458_v39, 0.0 }
 0x3d0   :  { %v1507_v48 = vmax.f32 %v2457_v46, 0.0  ;;  %v1509_v49 = vmax.f32 %v2459_v47, 0.0 }
 0x3d2   :  { %1645 = vmatprep.mubr.f32.mxu0 %v1507_v48  ;;  %1715 = vmatprep.mubr.f32.mxu1 %v1509_v49 }
 0x3d3   :  { %1646 = vmatmul.mubr.f32.vlgmr.msra.gmra.mrb[6].mxu0 %v1506_v50  ;;  %1716 = vmatmul.mubr.f32.vlgmr.msra.gmra.mrb[6].mxu1 %v1508_v52 }
 0x4a6   :  { %v1774_v42 = vpop.f32.mrb[6].mxu0  ;;  %v1809_v44 = vpop.f32.mrb[6].mxu1 }
 0x4a7   :  { %v1775_v6 = vpop.f32.mrb[7].mxu0  ;;  %v1810_v53 = vpop.f32.mrb[7].mxu1 }
 0x4a8   :  { %v1776_v54 = vadd.f32 %v1775_v6, %v1774_v42  ;;  %v1811_v55 = vadd.f32 %v1810_v53, %v1809_v44 }
 0x4aa   :  { %v1648_v56 = vadd.f32 %v1776_v54, %v1741_v51 }
 0x4ac   :  { %v1718_v57 = vadd.f32 %v1811_v55, %v1648_v56 }
 0x4ae   :  { %1721 = vst [vmem:[#allocation17] sm:$0xff] %v1718_v57 }
 0x4af   :  { %2692 = shalt.err (!%p2689_p6)
}
 0x4b0   :  { %s2693_s18 = scalar_lea.hbm %s2966_s9, 128 }
 0x4b1   :  { %p2694_p7 = scmp.ne.s32.totalorder %s2966_s9, %s2693_s18  ;;  %p2697_p8 = scmp.lt.u32.totalorder %s2693_s18, %s2966_s9 }
 0x4b3   :  { %p2699_p9 = pnand %p2697_p8, %p2694_p7 }
 0x4b5   :  { %2702 = shalt.err (!%p2699_p9)
}
 0x4b6   :  { %1731 = dma.vmem_to_hbm [thread:$0]  %s1729_s25, 128, %s2966_s9, [#allocation4]  }
 0x4b7   :  { %2713 = dma.done.wait [#allocation4], 128  }
 0x4b8   :  { %2714 = vsyncadd [#allocation4], 4294967168 }
 0x4b9   :  { %1735 = vsyncpa [#allocation3], 1 }
 0x4ba   :  { %1736 = vsyncpa [#allocation6], 1 }
 0x4bb   :  { %1737 = vsyncpa [#allocation9], 1 }
 0x4bc   :  { %1738 = vsyncpa [#allocation12], 1 }
 0x4bd   :  { %1739 = vsyncpa [#allocation15], 1 }
 0x4be   :  { %1740 = vsyncpa [#allocation4], 1 }

</bundles_post_ra>
